<compile_context>
chip_gen: v5e
topology: v5e:2x2
jax: 0.10.0
libtpu: 0.0.40
codegen_flags: <defaults>
</compile_context>

<pallas_src>
import functools

import jax
import jax.numpy as jnp
from jax import lax
from jax.experimental import pallas as pl
from jax.experimental.pallas import tpu as pltpu


# -------------------------------- kernel -----------------------------------

def nafblock_kernel(x_ref, masks_ref, pw_ref, out_ref, *, eps, width):
    G, C, HW = x_ref.shape          # G images folded into the lane axis
    W = width
    L = G * HW
    DW = 2 * C

    # Fold G images into one lane-dense (C, G*HW) tile (aligned lane copies).
    if G == 1:
        x = x_ref[0]
    else:
        x = jnp.concatenate([x_ref[n] for n in range(G)], axis=1)

    masks = masks_ref[...]          # (8, L): one row per non-centre dw tap
    pw = pw_ref[...]                # (2C, 5C+21): packed weights / biases

    # ---- unpack the packed parameter array (static column offsets) ----
    o = 0
    w1 = pw[:, o:o + C]; o += C                 # (2C, C)
    w4 = pw[:, o:o + C]; o += C                 # (2C, C)
    wsca = pw[:C, o:o + C]; o += C              # (C, C)
    w3 = pw[:C, o:o + C]; o += C                # (C, C)
    w5 = pw[:C, o:o + C]; o += C                # (C, C)
    wdw = pw[:, o:o + 9]; o += 9                # (2C, 9) dw taps, row-major
    b1 = pw[:, o:o + 1]; o += 1
    bdw = pw[:, o:o + 1]; o += 1
    b4 = pw[:, o:o + 1]; o += 1
    ln1_w = pw[:C, o:o + 1]; o += 1
    ln1_b = pw[:C, o:o + 1]; o += 1
    bsca = pw[:C, o:o + 1]; o += 1
    b3 = pw[:C, o:o + 1]; o += 1
    ln2_w = pw[:C, o:o + 1]; o += 1
    ln2_b = pw[:C, o:o + 1]; o += 1
    b5 = pw[:C, o:o + 1]; o += 1
    beta = pw[:C, o:o + 1]; o += 1
    gamma = pw[:C, o:o + 1]; o += 1

    def layer_norm(v, wln, bln):
        # single pass: mean & E[x^2] together, rsqrt on the EUP
        mu = jnp.mean(v, axis=0, keepdims=True)
        msq = jnp.mean(v * v, axis=0, keepdims=True)
        inv = lax.rsqrt(msq - mu * mu + eps)
        return (v - mu) * inv * wln + bln

    def conv1x1(wm, bm, v):
        # (Cout, Cin) x (Cin, L) on the VPU as unrolled rank-1 broadcast-FMAs
        cin = v.shape[0]
        acc = wm[:, 0:1] * v[0:1, :] + bm
        for i in range(1, cin):
            acc = acc + wm[:, i:i + 1] * v[i:i + 1, :]
        return acc

    # ----- branch 1: norm1 -> conv1 -> dwconv3x3 -> SimpleGate -> SCA -> conv3
    xn = layer_norm(x, ln1_w, ln1_b)
    t = conv1x1(w1, b1, xn)                                 # (2C, L)

    # 3x3 depthwise conv, padding=1: centre tap initialises the accumulator,
    # then 8 lane rolls (XLU) masked at image/row/column boundaries.
    acc = t * wdw[:, 4:5] + bdw
    tap = 0
    for ky in range(3):
        for kx in range(3):
            if ky == 1 and kx == 1:
                continue
            s = (ky - 1) * W + (kx - 1)                     # neighbour offset
            sh = pltpu.roll(t, shift=(-s) % L, axis=1)      # sh[p] = t[p + s]
            acc = acc + (sh * masks[tap:tap + 1, :]) * wdw[:, 3 * ky + kx:3 * ky + kx + 1]
            tap += 1

    # SimpleGate: split along the sublane (channel) axis
    g = acc[:C, :] * acc[C:, :]                             # (C, L)

    # SCA: per-image global average pool (segments are lane-tile aligned)
    pooled = jnp.concatenate(
        [jnp.mean(g[:, n * HW:(n + 1) * HW], axis=1, keepdims=True)
         for n in range(G)], axis=1)                        # (C, G)
    sca = conv1x1(wsca, bsca, pooled)                       # (C, G)
    if G == 1:
        g = g * sca
    else:
        g = jnp.concatenate(
            [g[:, n * HW:(n + 1) * HW] * sca[:, n:n + 1] for n in range(G)],
            axis=1)

    x3 = conv1x1(w3, b3, g)                                 # (C, L)

    # dropout1 is Identity (drop_out_rate = 0)
    y = x + x3 * beta

    # ----- branch 2 (FFN): norm2 -> conv4 -> SimpleGate -> conv5
    yn = layer_norm(y, ln2_w, ln2_b)
    t2 = conv1x1(w4, b4, yn)                                # (2C, L)
    g2 = t2[:C, :] * t2[C:, :]
    x5 = conv1x1(w5, b5, g2)

    # dropout2 is Identity (drop_out_rate = 0)
    res = (y + x5 * gamma).astype(out_ref.dtype)
    if G == 1:
        out_ref[0] = res
    else:
        for n in range(G):
            out_ref[n] = res[:, n * HW:(n + 1) * HW]        # aligned lane slices


# ------------------------------- wrapper ------------------------------------

def nafblock_pallas(x_nchw, params, eps=1e-6, images_per_step=None):
    N, C, H, W = x_nchw.shape
    HW = H * W
    if images_per_step is None:
        images_per_step = N   # grid=(1,): best on single-TC v5e/v6e
        # TODO(synk): on v7x (2 TensorCores) prefer images_per_step = max(1, N // 2)
    G = images_per_step
    assert N % G == 0
    L = G * HW

    # NCHW -> (N, C, H*W): pure reshape, no transpose / extra HBM pass.
    x = jnp.asarray(x_nchw, jnp.float32).reshape(N, C, HW)

    # Per-tap boundary masks (row-major tap order, centre excluded), one row
    # per tap, tiled over the G images folded into a grid step.
    row = jnp.arange(HW, dtype=jnp.int32) // W
    col = jnp.arange(HW, dtype=jnp.int32) % W
    mask_rows = []
    for ky in range(3):
        for kx in range(3):
            if ky == 1 and kx == 1:
                continue
            di, dj = ky - 1, kx - 1
            m = jnp.ones((HW,), jnp.float32)
            if di == -1:
                m = m * (row != 0).astype(jnp.float32)
            if di == 1:
                m = m * (row != H - 1).astype(jnp.float32)
            if dj == -1:
                m = m * (col != 0).astype(jnp.float32)
            if dj == 1:
                m = m * (col != W - 1).astype(jnp.float32)
            mask_rows.append(m)
    masks = jnp.tile(jnp.stack(mask_rows, axis=0), (1, G))   # (8, L)

    # Pack every weight / bias / per-channel parameter into ONE small array.
    DW = 2 * C

    def f32(a):
        return jnp.asarray(a, jnp.float32)

    def colv(a):
        return f32(a).reshape(-1, 1)

    def padr(a):                      # zero-pad rows up to 2C
        a = f32(a)
        return jnp.pad(a, ((0, DW - a.shape[0]), (0, 0)))

    pw = jnp.concatenate([
        f32(params['w1']),                       # (2C, C)
        f32(params['w4']),                       # (2C, C)
        padr(params['wsca']),                    # (2C, C)
        padr(params['w3']),                      # (2C, C)
        padr(params['w5']),                      # (2C, C)
        f32(params['wdw']).reshape(DW, 9),       # (2C, 9)
        colv(params['b1']), colv(params['bdw']), colv(params['b4']),
        padr(colv(params['ln1_w'])), padr(colv(params['ln1_b'])),
        padr(colv(params['bsca'])), padr(colv(params['b3'])),
        padr(colv(params['ln2_w'])), padr(colv(params['ln2_b'])),
        padr(colv(params['b5'])), padr(colv(params['beta'])),
        padr(colv(params['gamma'])),
    ], axis=1)                                   # (2C, 5C + 21)

    kernel = functools.partial(nafblock_kernel, eps=eps, width=W)

    out = pl.pallas_call(
        kernel,
        out_shape=jax.ShapeDtypeStruct((N, C, HW), jnp.float32),
        grid_spec=pltpu.PrefetchScalarGridSpec(
            num_scalar_prefetch=0,
            grid=(N // G,),
            in_specs=[pl.BlockSpec((G, C, HW), lambda i: (i, 0, 0)),
                      pl.BlockSpec(masks.shape, lambda i: (0, 0)),
                      pl.BlockSpec(pw.shape, lambda i: (0, 0))],
            out_specs=pl.BlockSpec((G, C, HW), lambda i: (i, 0, 0)),
        ),
        compiler_params=pltpu.CompilerParams(
            dimension_semantics=("parallel",),
            vmem_limit_bytes=32 * 1024 * 1024),
    )(x, masks, pw)

    return out.reshape(N, C, H, W)               # back to NCHW (reshape only)


# ------------------------- deterministic parameters -------------------------

def init_params(c, key):
    dw = 2 * c          # DW_Expand = 2
    ffn = 2 * c         # FFN_Expand = 2
    keys = jax.random.split(key, 14)

    def rnd(k, shape, scale=0.1):
        return scale * jax.random.normal(k, shape, jnp.float32)

    # NOTE: torch inits beta/gamma to zeros (block would be identity); we use
    # small non-zero values so the whole compute path is exercised.
    # 1x1 conv weights use the torch (Cout, Cin) convention.
    return {
        'ln1_w': jnp.ones((c,), jnp.float32),
        'ln1_b': jnp.zeros((c,), jnp.float32),
        'w1':   rnd(keys[0], (dw, c)),
        'b1':   rnd(keys[1], (dw,)),
        'wdw':  rnd(keys[2], (dw, 3, 3)),       # depthwise 3x3, (2C, kh, kw)
        'bdw':  rnd(keys[3], (dw,)),
        'wsca': rnd(keys[4], (dw // 2, dw // 2)),
        'bsca': rnd(keys[5], (dw // 2,)),
        'w3':   rnd(keys[6], (c, dw // 2)),
        'b3':   rnd(keys[7], (c,)),
        'ln2_w': jnp.ones((c,), jnp.float32),
        'ln2_b': jnp.zeros((c,), jnp.float32),
        'w4':   rnd(keys[8], (ffn, c)),
        'b4':   rnd(keys[9], (ffn,)),
        'w5':   rnd(keys[10], (c, ffn // 2)),
        'b5':   rnd(keys[11], (c,)),
        'beta':  rnd(keys[12], (c,)),
        'gamma': rnd(keys[13], (c,)),
    }


# ------------------------- pure-JAX reference (NCHW) ------------------------

def nafblock_ref(x, p, eps=1e-6):
    def ln(v, w, b):
        mu = v.mean(1, keepdims=True)
        var = ((v - mu) ** 2).mean(1, keepdims=True)
        y = (v - mu) / jnp.sqrt(var + eps)
        return w.reshape(1, -1, 1, 1) * y + b.reshape(1, -1, 1, 1)

    def conv1x1(v, w, b):                       # w: (Cout, Cin)
        return jnp.einsum('oi,nihw->nohw', w, v) + b.reshape(1, -1, 1, 1)

    inp = x
    x = ln(x, p['ln1_w'], p['ln1_b'])
    x = conv1x1(x, p['w1'], p['b1'])
    dw = x.shape[1]
    kernel = p['wdw'][:, None, :, :]            # (2C, 1, 3, 3)
    x = lax.conv_general_dilated(x, kernel, (1, 1), 'SAME',
                                 feature_group_count=dw,
                                 dimension_numbers=('NCHW', 'OIHW', 'NCHW'))
    x = x + p['bdw'].reshape(1, -1, 1, 1)
    x1, x2 = jnp.split(x, 2, axis=1)
    x = x1 * x2
    pooled = x.mean((2, 3), keepdims=True)
    sca = jnp.einsum('oi,nihw->nohw', p['wsca'], pooled) + p['bsca'].reshape(1, -1, 1, 1)
    x = x * sca
    x = conv1x1(x, p['w3'], p['b3'])
    y = inp + x * p['beta'].reshape(1, -1, 1, 1)
    x = conv1x1(ln(y, p['ln2_w'], p['ln2_b']), p['w4'], p['b4'])
    x1, x2 = jnp.split(x, 2, axis=1)
    x = x1 * x2
    x = conv1x1(x, p['w5'], p['b5'])
    return y + x * p['gamma'].reshape(1, -1, 1, 1)


# --------------------------------- main --------------------------------------

if __name__ == "__main__":
    N, C, H, W = 2, 4, 16, 16
    key = jax.random.PRNGKey(0)
    k_x, k_p = jax.random.split(key)

    x = jax.random.normal(k_x, (N, C, H, W), jnp.float32)
    params = init_params(C, k_p)

    out = jax.block_until_ready(jax.jit(nafblock_pallas)(x, params))
    ref = jax.block_until_ready(nafblock_ref(x, params))

    assert out.shape == (N, C, H, W)
    err = jnp.max(jnp.abs(out - ref))
    assert jnp.allclose(out, ref, atol=1e-4, rtol=1e-4), f"max abs err {err}"

    print("KERNEL_OK")
</pallas_src>

<mosaic_0001>
module attributes {stable_mosaic.version = 11 : i64} {
  func.func @nafblock_kernel(%arg0: i32, %arg1: memref<2x4x256xf32, #tpu.memory_space<vmem>>, %arg2: memref<8x512xf32, #tpu.memory_space<vmem>>, %arg3: memref<8x41xf32, #tpu.memory_space<vmem>>, %arg4: memref<2x4x256xf32, #tpu.memory_space<vmem>>) attributes {dimension_semantics = [#tpu.dimension_semantics<parallel>], iteration_bounds = array<i64: 1>, scalar_prefetch = 0 : i64, scratch_operands = 0 : i64, tpu.core_type = #tpu.core_type<tc>, window_params = [{transform_indices = @transform_0, window_bounds = array<i64: 2, 4, 256>}, {pipeline_mode = #tpu.pipeline_mode<synchronous>, transform_indices = @transform_1, window_bounds = array<i64: 8, 512>}, {pipeline_mode = #tpu.pipeline_mode<synchronous>, transform_indices = @transform_2, window_bounds = array<i64: 8, 41>}, {transform_indices = @transform_3, window_bounds = array<i64: 2, 4, 256>}]} {
    %c0 = arith.constant 0 : index
    %c0_0 = arith.constant 0 : index
    %c0_1 = arith.constant 0 : index
    %0 = vector.load %arg1[%c0, %c0_0, %c0_1] : memref<2x4x256xf32, #tpu.memory_space<vmem>>, vector<1x4x256xf32>
    %1 = vector.shape_cast %0 : vector<1x4x256xf32> to vector<4x256xf32>
    %c1 = arith.constant 1 : index
    %c0_2 = arith.constant 0 : index
    %c0_3 = arith.constant 0 : index
    %2 = vector.load %arg1[%c1, %c0_2, %c0_3] : memref<2x4x256xf32, #tpu.memory_space<vmem>>, vector<1x4x256xf32>
    %3 = vector.shape_cast %2 : vector<1x4x256xf32> to vector<4x256xf32>
    %4 = tpu.concatenate %1, %3 in 1 : vector<4x256xf32>, vector<4x256xf32> -> vector<4x512xf32>
    %c0_4 = arith.constant 0 : index
    %c0_5 = arith.constant 0 : index
    %5 = vector.load %arg2[%c0_4, %c0_5] : memref<8x512xf32, #tpu.memory_space<vmem>>, vector<8x512xf32>
    %c0_6 = arith.constant 0 : index
    %c0_7 = arith.constant 0 : index
    %6 = vector.load %arg3[%c0_6, %c0_7] : memref<8x41xf32, #tpu.memory_space<vmem>>, vector<8x41xf32>
    %7 = vector.extract_strided_slice %6 {offsets = [0, 0], sizes = [8, 4], strides = [1, 1]} : vector<8x41xf32> to vector<8x4xf32>
    %8 = vector.extract_strided_slice %6 {offsets = [0, 4], sizes = [8, 4], strides = [1, 1]} : vector<8x41xf32> to vector<8x4xf32>
    %9 = vector.extract_strided_slice %6 {offsets = [0, 8], sizes = [4, 4], strides = [1, 1]} : vector<8x41xf32> to vector<4x4xf32>
    %10 = vector.extract_strided_slice %6 {offsets = [0, 12], sizes = [4, 4], strides = [1, 1]} : vector<8x41xf32> to vector<4x4xf32>
    %11 = vector.extract_strided_slice %6 {offsets = [0, 16], sizes = [4, 4], strides = [1, 1]} : vector<8x41xf32> to vector<4x4xf32>
    %12 = vector.extract_strided_slice %6 {offsets = [0, 20], sizes = [8, 9], strides = [1, 1]} : vector<8x41xf32> to vector<8x9xf32>
    %13 = vector.extract_strided_slice %6 {offsets = [0, 29], sizes = [8, 1], strides = [1, 1]} : vector<8x41xf32> to vector<8x1xf32>
    %14 = vector.extract_strided_slice %6 {offsets = [0, 30], sizes = [8, 1], strides = [1, 1]} : vector<8x41xf32> to vector<8x1xf32>
    %15 = vector.extract_strided_slice %6 {offsets = [0, 31], sizes = [8, 1], strides = [1, 1]} : vector<8x41xf32> to vector<8x1xf32>
    %16 = vector.extract_strided_slice %6 {offsets = [0, 32], sizes = [4, 1], strides = [1, 1]} : vector<8x41xf32> to vector<4x1xf32>
    %17 = vector.extract_strided_slice %6 {offsets = [0, 33], sizes = [4, 1], strides = [1, 1]} : vector<8x41xf32> to vector<4x1xf32>
    %18 = vector.extract_strided_slice %6 {offsets = [0, 34], sizes = [4, 1], strides = [1, 1]} : vector<8x41xf32> to vector<4x1xf32>
    %19 = vector.extract_strided_slice %6 {offsets = [0, 35], sizes = [4, 1], strides = [1, 1]} : vector<8x41xf32> to vector<4x1xf32>
    %20 = vector.extract_strided_slice %6 {offsets = [0, 36], sizes = [4, 1], strides = [1, 1]} : vector<8x41xf32> to vector<4x1xf32>
    %21 = vector.extract_strided_slice %6 {offsets = [0, 37], sizes = [4, 1], strides = [1, 1]} : vector<8x41xf32> to vector<4x1xf32>
    %22 = vector.extract_strided_slice %6 {offsets = [0, 38], sizes = [4, 1], strides = [1, 1]} : vector<8x41xf32> to vector<4x1xf32>
    %23 = vector.extract_strided_slice %6 {offsets = [0, 39], sizes = [4, 1], strides = [1, 1]} : vector<8x41xf32> to vector<4x1xf32>
    %24 = vector.extract_strided_slice %6 {offsets = [0, 40], sizes = [4, 1], strides = [1, 1]} : vector<8x41xf32> to vector<4x1xf32>
    %cst = arith.constant dense<0.000000e+00> : vector<512xf32>
    %25 = vector.multi_reduction <add>, %4, %cst [0] : vector<4x512xf32> to vector<512xf32>
    %26 = vector.shape_cast %25 : vector<512xf32> to vector<1x512xf32>
    %cst_8 = arith.constant 4.000000e+00 : f32
    %27 = vector.broadcast %cst_8 : f32 to vector<1x512xf32>
    %28 = arith.divf %26, %27 : vector<1x512xf32>
    %29 = arith.mulf %4, %4 : vector<4x512xf32>
    %cst_9 = arith.constant dense<0.000000e+00> : vector<512xf32>
    %30 = vector.multi_reduction <add>, %29, %cst_9 [0] : vector<4x512xf32> to vector<512xf32>
    %31 = vector.shape_cast %30 : vector<512xf32> to vector<1x512xf32>
    %cst_10 = arith.constant 4.000000e+00 : f32
    %32 = vector.broadcast %cst_10 : f32 to vector<1x512xf32>
    %33 = arith.divf %31, %32 : vector<1x512xf32>
    %34 = arith.mulf %28, %28 : vector<1x512xf32>
    %35 = arith.subf %33, %34 : vector<1x512xf32>
    %cst_11 = arith.constant 9.99999997E-7 : f32
    %36 = vector.broadcast %cst_11 : f32 to vector<1x512xf32>
    %37 = arith.addf %35, %36 : vector<1x512xf32>
    %38 = math.rsqrt %37 : vector<1x512xf32>
    %39 = vector.broadcast %28 : vector<1x512xf32> to vector<4x512xf32>
    %40 = arith.subf %4, %39 : vector<4x512xf32>
    %41 = vector.broadcast %38 : vector<1x512xf32> to vector<4x512xf32>
    %42 = arith.mulf %40, %41 : vector<4x512xf32>
    %43 = vector.broadcast %16 : vector<4x1xf32> to vector<4x512xf32>
    %44 = arith.mulf %42, %43 : vector<4x512xf32>
    %45 = vector.broadcast %17 : vector<4x1xf32> to vector<4x512xf32>
    %46 = arith.addf %44, %45 : vector<4x512xf32>
    %47 = vector.extract_strided_slice %7 {offsets = [0, 0], sizes = [8, 1], strides = [1, 1]} : vector<8x4xf32> to vector<8x1xf32>
    %48 = vector.extract_strided_slice %46 {offsets = [0, 0], sizes = [1, 512], strides = [1, 1]} : vector<4x512xf32> to vector<1x512xf32>
    %49 = vector.broadcast %47 : vector<8x1xf32> to vector<8x512xf32>
    %50 = vector.broadcast %48 : vector<1x512xf32> to vector<8x512xf32>
    %51 = arith.mulf %49, %50 : vector<8x512xf32>
    %52 = vector.broadcast %13 : vector<8x1xf32> to vector<8x512xf32>
    %53 = arith.addf %51, %52 : vector<8x512xf32>
    %54 = vector.extract_strided_slice %7 {offsets = [0, 1], sizes = [8, 1], strides = [1, 1]} : vector<8x4xf32> to vector<8x1xf32>
    %55 = vector.extract_strided_slice %46 {offsets = [1, 0], sizes = [1, 512], strides = [1, 1]} : vector<4x512xf32> to vector<1x512xf32>
    %56 = vector.broadcast %54 : vector<8x1xf32> to vector<8x512xf32>
    %57 = vector.broadcast %55 : vector<1x512xf32> to vector<8x512xf32>
    %58 = arith.mulf %56, %57 : vector<8x512xf32>
    %59 = arith.addf %53, %58 : vector<8x512xf32>
    %60 = vector.extract_strided_slice %7 {offsets = [0, 2], sizes = [8, 1], strides = [1, 1]} : vector<8x4xf32> to vector<8x1xf32>
    %61 = vector.extract_strided_slice %46 {offsets = [2, 0], sizes = [1, 512], strides = [1, 1]} : vector<4x512xf32> to vector<1x512xf32>
    %62 = vector.broadcast %60 : vector<8x1xf32> to vector<8x512xf32>
    %63 = vector.broadcast %61 : vector<1x512xf32> to vector<8x512xf32>
    %64 = arith.mulf %62, %63 : vector<8x512xf32>
    %65 = arith.addf %59, %64 : vector<8x512xf32>
    %66 = vector.extract_strided_slice %7 {offsets = [0, 3], sizes = [8, 1], strides = [1, 1]} : vector<8x4xf32> to vector<8x1xf32>
    %67 = vector.extract_strided_slice %46 {offsets = [3, 0], sizes = [1, 512], strides = [1, 1]} : vector<4x512xf32> to vector<1x512xf32>
    %68 = vector.broadcast %66 : vector<8x1xf32> to vector<8x512xf32>
    %69 = vector.broadcast %67 : vector<1x512xf32> to vector<8x512xf32>
    %70 = arith.mulf %68, %69 : vector<8x512xf32>
    %71 = arith.addf %65, %70 : vector<8x512xf32>
    %72 = vector.extract_strided_slice %12 {offsets = [0, 4], sizes = [8, 1], strides = [1, 1]} : vector<8x9xf32> to vector<8x1xf32>
    %73 = vector.broadcast %72 : vector<8x1xf32> to vector<8x512xf32>
    %74 = arith.mulf %71, %73 : vector<8x512xf32>
    %75 = vector.broadcast %14 : vector<8x1xf32> to vector<8x512xf32>
    %76 = arith.addf %74, %75 : vector<8x512xf32>
    %c17_i32 = arith.constant 17 : i32
    %77 = tpu.dynamic_rotate %71 by %c17_i32 dim 1 : vector<8x512xf32>, i32 -> vector<8x512xf32>
    %78 = vector.extract_strided_slice %5 {offsets = [0, 0], sizes = [1, 512], strides = [1, 1]} : vector<8x512xf32> to vector<1x512xf32>
    %79 = vector.broadcast %78 : vector<1x512xf32> to vector<8x512xf32>
    %80 = arith.mulf %77, %79 : vector<8x512xf32>
    %81 = vector.extract_strided_slice %12 {offsets = [0, 0], sizes = [8, 1], strides = [1, 1]} : vector<8x9xf32> to vector<8x1xf32>
    %82 = vector.broadcast %81 : vector<8x1xf32> to vector<8x512xf32>
    %83 = arith.mulf %80, %82 : vector<8x512xf32>
    %84 = arith.addf %76, %83 : vector<8x512xf32>
    %c16_i32 = arith.constant 16 : i32
    %85 = tpu.dynamic_rotate %71 by %c16_i32 dim 1 : vector<8x512xf32>, i32 -> vector<8x512xf32>
    %86 = vector.extract_strided_slice %5 {offsets = [1, 0], sizes = [1, 512], strides = [1, 1]} : vector<8x512xf32> to vector<1x512xf32>
    %87 = vector.broadcast %86 : vector<1x512xf32> to vector<8x512xf32>
    %88 = arith.mulf %85, %87 : vector<8x512xf32>
    %89 = vector.extract_strided_slice %12 {offsets = [0, 1], sizes = [8, 1], strides = [1, 1]} : vector<8x9xf32> to vector<8x1xf32>
    %90 = vector.broadcast %89 : vector<8x1xf32> to vector<8x512xf32>
    %91 = arith.mulf %88, %90 : vector<8x512xf32>
    %92 = arith.addf %84, %91 : vector<8x512xf32>
    %c15_i32 = arith.constant 15 : i32
    %93 = tpu.dynamic_rotate %71 by %c15_i32 dim 1 : vector<8x512xf32>, i32 -> vector<8x512xf32>
    %94 = vector.extract_strided_slice %5 {offsets = [2, 0], sizes = [1, 512], strides = [1, 1]} : vector<8x512xf32> to vector<1x512xf32>
    %95 = vector.broadcast %94 : vector<1x512xf32> to vector<8x512xf32>
    %96 = arith.mulf %93, %95 : vector<8x512xf32>
    %97 = vector.extract_strided_slice %12 {offsets = [0, 2], sizes = [8, 1], strides = [1, 1]} : vector<8x9xf32> to vector<8x1xf32>
    %98 = vector.broadcast %97 : vector<8x1xf32> to vector<8x512xf32>
    %99 = arith.mulf %96, %98 : vector<8x512xf32>
    %100 = arith.addf %92, %99 : vector<8x512xf32>
    %c1_i32 = arith.constant 1 : i32
    %101 = tpu.dynamic_rotate %71 by %c1_i32 dim 1 : vector<8x512xf32>, i32 -> vector<8x512xf32>
    %102 = vector.extract_strided_slice %5 {offsets = [3, 0], sizes = [1, 512], strides = [1, 1]} : vector<8x512xf32> to vector<1x512xf32>
    %103 = vector.broadcast %102 : vector<1x512xf32> to vector<8x512xf32>
    %104 = arith.mulf %101, %103 : vector<8x512xf32>
    %105 = vector.extract_strided_slice %12 {offsets = [0, 3], sizes = [8, 1], strides = [1, 1]} : vector<8x9xf32> to vector<8x1xf32>
    %106 = vector.broadcast %105 : vector<8x1xf32> to vector<8x512xf32>
    %107 = arith.mulf %104, %106 : vector<8x512xf32>
    %108 = arith.addf %100, %107 : vector<8x512xf32>
    %c511_i32 = arith.constant 511 : i32
    %109 = tpu.dynamic_rotate %71 by %c511_i32 dim 1 : vector<8x512xf32>, i32 -> vector<8x512xf32>
    %110 = vector.extract_strided_slice %5 {offsets = [4, 0], sizes = [1, 512], strides = [1, 1]} : vector<8x512xf32> to vector<1x512xf32>
    %111 = vector.broadcast %110 : vector<1x512xf32> to vector<8x512xf32>
    %112 = arith.mulf %109, %111 : vector<8x512xf32>
    %113 = vector.extract_strided_slice %12 {offsets = [0, 5], sizes = [8, 1], strides = [1, 1]} : vector<8x9xf32> to vector<8x1xf32>
    %114 = vector.broadcast %113 : vector<8x1xf32> to vector<8x512xf32>
    %115 = arith.mulf %112, %114 : vector<8x512xf32>
    %116 = arith.addf %108, %115 : vector<8x512xf32>
    %c497_i32 = arith.constant 497 : i32
    %117 = tpu.dynamic_rotate %71 by %c497_i32 dim 1 : vector<8x512xf32>, i32 -> vector<8x512xf32>
    %118 = vector.extract_strided_slice %5 {offsets = [5, 0], sizes = [1, 512], strides = [1, 1]} : vector<8x512xf32> to vector<1x512xf32>
    %119 = vector.broadcast %118 : vector<1x512xf32> to vector<8x512xf32>
    %120 = arith.mulf %117, %119 : vector<8x512xf32>
    %121 = vector.extract_strided_slice %12 {offsets = [0, 6], sizes = [8, 1], strides = [1, 1]} : vector<8x9xf32> to vector<8x1xf32>
    %122 = vector.broadcast %121 : vector<8x1xf32> to vector<8x512xf32>
    %123 = arith.mulf %120, %122 : vector<8x512xf32>
    %124 = arith.addf %116, %123 : vector<8x512xf32>
    %c496_i32 = arith.constant 496 : i32
    %125 = tpu.dynamic_rotate %71 by %c496_i32 dim 1 : vector<8x512xf32>, i32 -> vector<8x512xf32>
    %126 = vector.extract_strided_slice %5 {offsets = [6, 0], sizes = [1, 512], strides = [1, 1]} : vector<8x512xf32> to vector<1x512xf32>
    %127 = vector.broadcast %126 : vector<1x512xf32> to vector<8x512xf32>
    %128 = arith.mulf %125, %127 : vector<8x512xf32>
    %129 = vector.extract_strided_slice %12 {offsets = [0, 7], sizes = [8, 1], strides = [1, 1]} : vector<8x9xf32> to vector<8x1xf32>
    %130 = vector.broadcast %129 : vector<8x1xf32> to vector<8x512xf32>
    %131 = arith.mulf %128, %130 : vector<8x512xf32>
    %132 = arith.addf %124, %131 : vector<8x512xf32>
    %c495_i32 = arith.constant 495 : i32
    %133 = tpu.dynamic_rotate %71 by %c495_i32 dim 1 : vector<8x512xf32>, i32 -> vector<8x512xf32>
    %134 = vector.extract_strided_slice %5 {offsets = [7, 0], sizes = [1, 512], strides = [1, 1]} : vector<8x512xf32> to vector<1x512xf32>
    %135 = vector.broadcast %134 : vector<1x512xf32> to vector<8x512xf32>
    %136 = arith.mulf %133, %135 : vector<8x512xf32>
    %137 = vector.extract_strided_slice %12 {offsets = [0, 8], sizes = [8, 1], strides = [1, 1]} : vector<8x9xf32> to vector<8x1xf32>
    %138 = vector.broadcast %137 : vector<8x1xf32> to vector<8x512xf32>
    %139 = arith.mulf %136, %138 : vector<8x512xf32>
    %140 = arith.addf %132, %139 : vector<8x512xf32>
    %141 = vector.extract_strided_slice %140 {offsets = [0, 0], sizes = [4, 512], strides = [1, 1]} : vector<8x512xf32> to vector<4x512xf32>
    %142 = vector.extract_strided_slice %140 {offsets = [4, 0], sizes = [4, 512], strides = [1, 1]} : vector<8x512xf32> to vector<4x512xf32>
    %143 = arith.mulf %141, %142 : vector<4x512xf32>
    %144 = vector.extract_strided_slice %143 {offsets = [0, 0], sizes = [4, 256], strides = [1, 1]} : vector<4x512xf32> to vector<4x256xf32>
    %cst_12 = arith.constant dense<0.000000e+00> : vector<4xf32>
    %145 = vector.multi_reduction <add>, %144, %cst_12 [1] : vector<4x256xf32> to vector<4xf32>
    %146 = vector.shape_cast %145 : vector<4xf32> to vector<4x1xf32>
    %cst_13 = arith.constant 2.560000e+02 : f32
    %147 = vector.broadcast %cst_13 : f32 to vector<4x1xf32>
    %148 = arith.divf %146, %147 : vector<4x1xf32>
    %149 = vector.extract_strided_slice %143 {offsets = [0, 256], sizes = [4, 256], strides = [1, 1]} : vector<4x512xf32> to vector<4x256xf32>
    %cst_14 = arith.constant dense<0.000000e+00> : vector<4xf32>
    %150 = vector.multi_reduction <add>, %149, %cst_14 [1] : vector<4x256xf32> to vector<4xf32>
    %151 = vector.shape_cast %150 : vector<4xf32> to vector<4x1xf32>
    %cst_15 = arith.constant 2.560000e+02 : f32
    %152 = vector.broadcast %cst_15 : f32 to vector<4x1xf32>
    %153 = arith.divf %151, %152 : vector<4x1xf32>
    %154 = tpu.concatenate %148, %153 in 1 : vector<4x1xf32>, vector<4x1xf32> -> vector<4x2xf32>
    %155 = vector.extract_strided_slice %9 {offsets = [0, 0], sizes = [4, 1], strides = [1, 1]} : vector<4x4xf32> to vector<4x1xf32>
    %156 = vector.extract_strided_slice %154 {offsets = [0, 0], sizes = [1, 2], strides = [1, 1]} : vector<4x2xf32> to vector<1x2xf32>
    %157 = vector.broadcast %155 : vector<4x1xf32> to vector<4x2xf32>
    %158 = vector.broadcast %156 : vector<1x2xf32> to vector<4x2xf32>
    %159 = arith.mulf %157, %158 : vector<4x2xf32>
    %160 = vector.broadcast %18 : vector<4x1xf32> to vector<4x2xf32>
    %161 = arith.addf %159, %160 : vector<4x2xf32>
    %162 = vector.extract_strided_slice %9 {offsets = [0, 1], sizes = [4, 1], strides = [1, 1]} : vector<4x4xf32> to vector<4x1xf32>
    %163 = vector.extract_strided_slice %154 {offsets = [1, 0], sizes = [1, 2], strides = [1, 1]} : vector<4x2xf32> to vector<1x2xf32>
    %164 = vector.broadcast %162 : vector<4x1xf32> to vector<4x2xf32>
    %165 = vector.broadcast %163 : vector<1x2xf32> to vector<4x2xf32>
    %166 = arith.mulf %164, %165 : vector<4x2xf32>
    %167 = arith.addf %161, %166 : vector<4x2xf32>
    %168 = vector.extract_strided_slice %9 {offsets = [0, 2], sizes = [4, 1], strides = [1, 1]} : vector<4x4xf32> to vector<4x1xf32>
    %169 = vector.extract_strided_slice %154 {offsets = [2, 0], sizes = [1, 2], strides = [1, 1]} : vector<4x2xf32> to vector<1x2xf32>
    %170 = vector.broadcast %168 : vector<4x1xf32> to vector<4x2xf32>
    %171 = vector.broadcast %169 : vector<1x2xf32> to vector<4x2xf32>
    %172 = arith.mulf %170, %171 : vector<4x2xf32>
    %173 = arith.addf %167, %172 : vector<4x2xf32>
    %174 = vector.extract_strided_slice %9 {offsets = [0, 3], sizes = [4, 1], strides = [1, 1]} : vector<4x4xf32> to vector<4x1xf32>
    %175 = vector.extract_strided_slice %154 {offsets = [3, 0], sizes = [1, 2], strides = [1, 1]} : vector<4x2xf32> to vector<1x2xf32>
    %176 = vector.broadcast %174 : vector<4x1xf32> to vector<4x2xf32>
    %177 = vector.broadcast %175 : vector<1x2xf32> to vector<4x2xf32>
    %178 = arith.mulf %176, %177 : vector<4x2xf32>
    %179 = arith.addf %173, %178 : vector<4x2xf32>
    %180 = vector.extract_strided_slice %143 {offsets = [0, 0], sizes = [4, 256], strides = [1, 1]} : vector<4x512xf32> to vector<4x256xf32>
    %181 = vector.extract_strided_slice %179 {offsets = [0, 0], sizes = [4, 1], strides = [1, 1]} : vector<4x2xf32> to vector<4x1xf32>
    %182 = vector.broadcast %181 : vector<4x1xf32> to vector<4x256xf32>
    %183 = arith.mulf %180, %182 : vector<4x256xf32>
    %184 = vector.extract_strided_slice %143 {offsets = [0, 256], sizes = [4, 256], strides = [1, 1]} : vector<4x512xf32> to vector<4x256xf32>
    %185 = vector.extract_strided_slice %179 {offsets = [0, 1], sizes = [4, 1], strides = [1, 1]} : vector<4x2xf32> to vector<4x1xf32>
    %186 = vector.broadcast %185 : vector<4x1xf32> to vector<4x256xf32>
    %187 = arith.mulf %184, %186 : vector<4x256xf32>
    %188 = tpu.concatenate %183, %187 in 1 : vector<4x256xf32>, vector<4x256xf32> -> vector<4x512xf32>
    %189 = vector.extract_strided_slice %10 {offsets = [0, 0], sizes = [4, 1], strides = [1, 1]} : vector<4x4xf32> to vector<4x1xf32>
    %190 = vector.extract_strided_slice %188 {offsets = [0, 0], sizes = [1, 512], strides = [1, 1]} : vector<4x512xf32> to vector<1x512xf32>
    %191 = vector.broadcast %189 : vector<4x1xf32> to vector<4x512xf32>
    %192 = vector.broadcast %190 : vector<1x512xf32> to vector<4x512xf32>
    %193 = arith.mulf %191, %192 : vector<4x512xf32>
    %194 = vector.broadcast %19 : vector<4x1xf32> to vector<4x512xf32>
    %195 = arith.addf %193, %194 : vector<4x512xf32>
    %196 = vector.extract_strided_slice %10 {offsets = [0, 1], sizes = [4, 1], strides = [1, 1]} : vector<4x4xf32> to vector<4x1xf32>
    %197 = vector.extract_strided_slice %188 {offsets = [1, 0], sizes = [1, 512], strides = [1, 1]} : vector<4x512xf32> to vector<1x512xf32>
    %198 = vector.broadcast %196 : vector<4x1xf32> to vector<4x512xf32>
    %199 = vector.broadcast %197 : vector<1x512xf32> to vector<4x512xf32>
    %200 = arith.mulf %198, %199 : vector<4x512xf32>
    %201 = arith.addf %195, %200 : vector<4x512xf32>
    %202 = vector.extract_strided_slice %10 {offsets = [0, 2], sizes = [4, 1], strides = [1, 1]} : vector<4x4xf32> to vector<4x1xf32>
    %203 = vector.extract_strided_slice %188 {offsets = [2, 0], sizes = [1, 512], strides = [1, 1]} : vector<4x512xf32> to vector<1x512xf32>
    %204 = vector.broadcast %202 : vector<4x1xf32> to vector<4x512xf32>
    %205 = vector.broadcast %203 : vector<1x512xf32> to vector<4x512xf32>
    %206 = arith.mulf %204, %205 : vector<4x512xf32>
    %207 = arith.addf %201, %206 : vector<4x512xf32>
    %208 = vector.extract_strided_slice %10 {offsets = [0, 3], sizes = [4, 1], strides = [1, 1]} : vector<4x4xf32> to vector<4x1xf32>
    %209 = vector.extract_strided_slice %188 {offsets = [3, 0], sizes = [1, 512], strides = [1, 1]} : vector<4x512xf32> to vector<1x512xf32>
    %210 = vector.broadcast %208 : vector<4x1xf32> to vector<4x512xf32>
    %211 = vector.broadcast %209 : vector<1x512xf32> to vector<4x512xf32>
    %212 = arith.mulf %210, %211 : vector<4x512xf32>
    %213 = arith.addf %207, %212 : vector<4x512xf32>
    %214 = vector.broadcast %23 : vector<4x1xf32> to vector<4x512xf32>
    %215 = arith.mulf %213, %214 : vector<4x512xf32>
    %216 = arith.addf %4, %215 : vector<4x512xf32>
    %cst_16 = arith.constant dense<0.000000e+00> : vector<512xf32>
    %217 = vector.multi_reduction <add>, %216, %cst_16 [0] : vector<4x512xf32> to vector<512xf32>
    %218 = vector.shape_cast %217 : vector<512xf32> to vector<1x512xf32>
    %cst_17 = arith.constant 4.000000e+00 : f32
    %219 = vector.broadcast %cst_17 : f32 to vector<1x512xf32>
    %220 = arith.divf %218, %219 : vector<1x512xf32>
    %221 = arith.mulf %216, %216 : vector<4x512xf32>
    %cst_18 = arith.constant dense<0.000000e+00> : vector<512xf32>
    %222 = vector.multi_reduction <add>, %221, %cst_18 [0] : vector<4x512xf32> to vector<512xf32>
    %223 = vector.shape_cast %222 : vector<512xf32> to vector<1x512xf32>
    %cst_19 = arith.constant 4.000000e+00 : f32
    %224 = vector.broadcast %cst_19 : f32 to vector<1x512xf32>
    %225 = arith.divf %223, %224 : vector<1x512xf32>
    %226 = arith.mulf %220, %220 : vector<1x512xf32>
    %227 = arith.subf %225, %226 : vector<1x512xf32>
    %cst_20 = arith.constant 9.99999997E-7 : f32
    %228 = vector.broadcast %cst_20 : f32 to vector<1x512xf32>
    %229 = arith.addf %227, %228 : vector<1x512xf32>
    %230 = math.rsqrt %229 : vector<1x512xf32>
    %231 = vector.broadcast %220 : vector<1x512xf32> to vector<4x512xf32>
    %232 = arith.subf %216, %231 : vector<4x512xf32>
    %233 = vector.broadcast %230 : vector<1x512xf32> to vector<4x512xf32>
    %234 = arith.mulf %232, %233 : vector<4x512xf32>
    %235 = vector.broadcast %20 : vector<4x1xf32> to vector<4x512xf32>
    %236 = arith.mulf %234, %235 : vector<4x512xf32>
    %237 = vector.broadcast %21 : vector<4x1xf32> to vector<4x512xf32>
    %238 = arith.addf %236, %237 : vector<4x512xf32>
    %239 = vector.extract_strided_slice %8 {offsets = [0, 0], sizes = [8, 1], strides = [1, 1]} : vector<8x4xf32> to vector<8x1xf32>
    %240 = vector.extract_strided_slice %238 {offsets = [0, 0], sizes = [1, 512], strides = [1, 1]} : vector<4x512xf32> to vector<1x512xf32>
    %241 = vector.broadcast %239 : vector<8x1xf32> to vector<8x512xf32>
    %242 = vector.broadcast %240 : vector<1x512xf32> to vector<8x512xf32>
    %243 = arith.mulf %241, %242 : vector<8x512xf32>
    %244 = vector.broadcast %15 : vector<8x1xf32> to vector<8x512xf32>
    %245 = arith.addf %243, %244 : vector<8x512xf32>
    %246 = vector.extract_strided_slice %8 {offsets = [0, 1], sizes = [8, 1], strides = [1, 1]} : vector<8x4xf32> to vector<8x1xf32>
    %247 = vector.extract_strided_slice %238 {offsets = [1, 0], sizes = [1, 512], strides = [1, 1]} : vector<4x512xf32> to vector<1x512xf32>
    %248 = vector.broadcast %246 : vector<8x1xf32> to vector<8x512xf32>
    %249 = vector.broadcast %247 : vector<1x512xf32> to vector<8x512xf32>
    %250 = arith.mulf %248, %249 : vector<8x512xf32>
    %251 = arith.addf %245, %250 : vector<8x512xf32>
    %252 = vector.extract_strided_slice %8 {offsets = [0, 2], sizes = [8, 1], strides = [1, 1]} : vector<8x4xf32> to vector<8x1xf32>
    %253 = vector.extract_strided_slice %238 {offsets = [2, 0], sizes = [1, 512], strides = [1, 1]} : vector<4x512xf32> to vector<1x512xf32>
    %254 = vector.broadcast %252 : vector<8x1xf32> to vector<8x512xf32>
    %255 = vector.broadcast %253 : vector<1x512xf32> to vector<8x512xf32>
    %256 = arith.mulf %254, %255 : vector<8x512xf32>
    %257 = arith.addf %251, %256 : vector<8x512xf32>
    %258 = vector.extract_strided_slice %8 {offsets = [0, 3], sizes = [8, 1], strides = [1, 1]} : vector<8x4xf32> to vector<8x1xf32>
    %259 = vector.extract_strided_slice %238 {offsets = [3, 0], sizes = [1, 512], strides = [1, 1]} : vector<4x512xf32> to vector<1x512xf32>
    %260 = vector.broadcast %258 : vector<8x1xf32> to vector<8x512xf32>
    %261 = vector.broadcast %259 : vector<1x512xf32> to vector<8x512xf32>
    %262 = arith.mulf %260, %261 : vector<8x512xf32>
    %263 = arith.addf %257, %262 : vector<8x512xf32>
    %264 = vector.extract_strided_slice %263 {offsets = [0, 0], sizes = [4, 512], strides = [1, 1]} : vector<8x512xf32> to vector<4x512xf32>
    %265 = vector.extract_strided_slice %263 {offsets = [4, 0], sizes = [4, 512], strides = [1, 1]} : vector<8x512xf32> to vector<4x512xf32>
    %266 = arith.mulf %264, %265 : vector<4x512xf32>
    %267 = vector.extract_strided_slice %11 {offsets = [0, 0], sizes = [4, 1], strides = [1, 1]} : vector<4x4xf32> to vector<4x1xf32>
    %268 = vector.extract_strided_slice %266 {offsets = [0, 0], sizes = [1, 512], strides = [1, 1]} : vector<4x512xf32> to vector<1x512xf32>
    %269 = vector.broadcast %267 : vector<4x1xf32> to vector<4x512xf32>
    %270 = vector.broadcast %268 : vector<1x512xf32> to vector<4x512xf32>
    %271 = arith.mulf %269, %270 : vector<4x512xf32>
    %272 = vector.broadcast %22 : vector<4x1xf32> to vector<4x512xf32>
    %273 = arith.addf %271, %272 : vector<4x512xf32>
    %274 = vector.extract_strided_slice %11 {offsets = [0, 1], sizes = [4, 1], strides = [1, 1]} : vector<4x4xf32> to vector<4x1xf32>
    %275 = vector.extract_strided_slice %266 {offsets = [1, 0], sizes = [1, 512], strides = [1, 1]} : vector<4x512xf32> to vector<1x512xf32>
    %276 = vector.broadcast %274 : vector<4x1xf32> to vector<4x512xf32>
    %277 = vector.broadcast %275 : vector<1x512xf32> to vector<4x512xf32>
    %278 = arith.mulf %276, %277 : vector<4x512xf32>
    %279 = arith.addf %273, %278 : vector<4x512xf32>
    %280 = vector.extract_strided_slice %11 {offsets = [0, 2], sizes = [4, 1], strides = [1, 1]} : vector<4x4xf32> to vector<4x1xf32>
    %281 = vector.extract_strided_slice %266 {offsets = [2, 0], sizes = [1, 512], strides = [1, 1]} : vector<4x512xf32> to vector<1x512xf32>
    %282 = vector.broadcast %280 : vector<4x1xf32> to vector<4x512xf32>
    %283 = vector.broadcast %281 : vector<1x512xf32> to vector<4x512xf32>
    %284 = arith.mulf %282, %283 : vector<4x512xf32>
    %285 = arith.addf %279, %284 : vector<4x512xf32>
    %286 = vector.extract_strided_slice %11 {offsets = [0, 3], sizes = [4, 1], strides = [1, 1]} : vector<4x4xf32> to vector<4x1xf32>
    %287 = vector.extract_strided_slice %266 {offsets = [3, 0], sizes = [1, 512], strides = [1, 1]} : vector<4x512xf32> to vector<1x512xf32>
    %288 = vector.broadcast %286 : vector<4x1xf32> to vector<4x512xf32>
    %289 = vector.broadcast %287 : vector<1x512xf32> to vector<4x512xf32>
    %290 = arith.mulf %288, %289 : vector<4x512xf32>
    %291 = arith.addf %285, %290 : vector<4x512xf32>
    %292 = vector.broadcast %24 : vector<4x1xf32> to vector<4x512xf32>
    %293 = arith.mulf %291, %292 : vector<4x512xf32>
    %294 = arith.addf %216, %293 : vector<4x512xf32>
    %295 = vector.extract_strided_slice %294 {offsets = [0, 0], sizes = [4, 256], strides = [1, 1]} : vector<4x512xf32> to vector<4x256xf32>
    %c0_21 = arith.constant 0 : index
    %c0_22 = arith.constant 0 : index
    %c0_23 = arith.constant 0 : index
    %296 = vector.load %arg4[%c0_21, %c0_22, %c0_23] : memref<2x4x256xf32, #tpu.memory_space<vmem>>, vector<1x4x256xf32>
    %297 = vector.shape_cast %296 : vector<1x4x256xf32> to vector<4x256xf32>
    %298 = vector.shape_cast %295 : vector<4x256xf32> to vector<1x4x256xf32>
    tpu.vector_store %arg4[%c0_21, %c0_22, %c0_23], %298 {strides = array<i32>} : memref<2x4x256xf32, #tpu.memory_space<vmem>>, vector<1x4x256xf32>,
    %299 = vector.extract_strided_slice %294 {offsets = [0, 256], sizes = [4, 256], strides = [1, 1]} : vector<4x512xf32> to vector<4x256xf32>
    %c1_24 = arith.constant 1 : index
    %c0_25 = arith.constant 0 : index
    %c0_26 = arith.constant 0 : index
    %300 = vector.load %arg4[%c1_24, %c0_25, %c0_26] : memref<2x4x256xf32, #tpu.memory_space<vmem>>, vector<1x4x256xf32>
    %301 = vector.shape_cast %300 : vector<1x4x256xf32> to vector<4x256xf32>
    %302 = vector.shape_cast %299 : vector<4x256xf32> to vector<1x4x256xf32>
    tpu.vector_store %arg4[%c1_24, %c0_25, %c0_26], %302 {strides = array<i32>} : memref<2x4x256xf32, #tpu.memory_space<vmem>>, vector<1x4x256xf32>,
    return
  }
  func.func @transform_0(%arg0: i32) -> (i32, i32, i32) {
    %c0_i32 = arith.constant 0 : i32
    %c0_i32_0 = arith.constant 0 : i32
    %c0_i32_1 = arith.constant 0 : i32
    return %arg0, %c0_i32, %c0_i32_0 : i32, i32, i32
  }
  func.func @transform_1(%arg0: i32) -> (i32, i32) {
    %c0_i32 = arith.constant 0 : i32
    %c0_i32_0 = arith.constant 0 : i32
    %c0_i32_1 = arith.constant 0 : i32
    return %c0_i32, %c0_i32_0 : i32, i32
  }
  func.func @transform_2(%arg0: i32) -> (i32, i32) {
    %c0_i32 = arith.constant 0 : i32
    %c0_i32_0 = arith.constant 0 : i32
    %c0_i32_1 = arith.constant 0 : i32
    return %c0_i32, %c0_i32_0 : i32, i32
  }
  func.func @transform_3(%arg0: i32) -> (i32, i32, i32) {
    %c0_i32 = arith.constant 0 : i32
    %c0_i32_0 = arith.constant 0 : i32
    %c0_i32_1 = arith.constant 0 : i32
    return %arg0, %c0_i32, %c0_i32_0 : i32, i32, i32
  }
}

</mosaic_0001>

<bundles_post_ra>
// kernel: nafblock_pallas.1
= control target key start
LH: loop header
LB: loop body
LE: loop exit
PB: predicated region body
PF: predicated region fallthrough
CT: control target
= control target key end

     0   :  { %v1144_v0 = vmov 0   ;;  %v1145_v1 = vmov 32   ;;  %v1146_v3 = vmov 1   ;;  %v1147_v4 = vmov 29   ;;  %s1161_s18 = smov 113   ;;  %s1162_s19 = smov 16   ;;  %s1685_s2 = inlined_call_operand.vmem [shape: f32[8,41], index: 2, kind: input, shape index: {}]   ;;  %s1686_s0 = inlined_call_operand.vmem [shape: f32[2,4,256], index: 0, kind: input, shape index: {}]   ;;  %s1687_s1 = inlined_call_operand.vmem [shape: f32[8,512], index: 1, kind: input, shape index: {}]   ;;  %s1688_s3 = inlined_call_operand.vmem [shape: f32[2,4,256], index: 3, kind: output, shape index: {}]  }
   0x1   :  { %1079 = vset.pattern.permute.xlu1 %v1144_v0  ;;  %1077 = vset.pattern.permute.xlu0 %v1145_v1  ;;  %v1219_v2 = vld [vmem:[%s1685_s2] sm:$0xff]  ;;  %v1148_v5 = vmov 33   ;;  %v1149_v6 = vmov 2   ;;  %v1150_v7 = vmov 3   ;;  %v1151_v8 = vmov 30   ;;  %v1024_v12 = vld [vmem:[%s1686_s0 + $0x8] sm:$0xff] }
   0x2   :  { %188 = vperm.xlu1 %1079, %v1219_v2   ;;  %172 = vperm.xlu0 %1077, %v1219_v2   ;;  %v1152_v9 = vmov 24   ;;  %v14_v10 = vld [vmem:[%s1686_s0] sm:$0xff]  ;;  %v1153_v11 = vmov 20   ;;  %v1154_v15 = vmov 21   ;;  %v1155_v16 = vmov 4.0   ;;  %s1160_s0 = smov 17  }
   0x3   :  { %1081 = vset.pattern.permute.xlu2 %v1146_v3  ;;  %18 = vst [vmem:[#allocation1] ss:$2 sm:$0xff] %v14_v10  ;;  %1121 = vrcp.f32 %v1155_v16  ;;  %vm34_vm0 = vcmask 1043456   ;;  %s1163_s20 = smov 112   ;;  %s1164_s21 = smov 15  }
   0x4   :  { %208 = vperm.xlu2 %1081, %v1219_v2   ;;  %s1166_s22 = smov 1   ;;  %s1167_s23 = smov 127  }
   0x5   :  { %s1169_s24 = smov 111  }
   0x9   :  { %v1122_v28 = vpop.eup %1121 }
   0xa   :  { %1080 = vset.pattern.permute.xlu1 %v1147_v4  ;;  %1078 = vset.pattern.permute.xlu0 %v1148_v5  ;;  %v1238_v13 = vld.sshfl [vmem:[#allocation1] sm:$0xff pattern:$0x75316420]  ;;  %v1240_v14 = vld.sshfl [vmem:[#allocation1 + $0x8] sm:$0xff pattern:$0x75316420]  ;;  %vm68_vm1 = vweird.f32 %v1122_v28 }
   0xb   :  { %200 = vperm.xlu1 %1080, %v1219_v2   ;;  %180 = vperm.xlu0 %1078, %v1219_v2   ;;  %24 = vst [vmem:[#allocation1] ss:$2 sm:$0xff] %v1024_v12  ;;  %v74_v19 = vmul.f32 %v1238_v13, %v1238_v13  ;;  %v75_v20 = vmul.f32 %v1240_v14, %v1240_v14  ;;  %v35_v21 = vsel %vm34_vm0, %v1238_v13, 0.0  ;;  %v42_v22 = vsel %vm34_vm0, %v1240_v14, 0.0 }
   0xc   :  { %1082 = vset.pattern.permute.xlu2 %v1149_v6  ;;  %v36_v25 = vrot.slane %v35_v21, 4  ;;  %v43_v26 = vrot.slane %v42_v22, 4  ;;  %v64_v38 = vmul.f32 4.0, %v1122_v28 }
   0xd   :  { %224 = vperm.xlu2 %1082, %v1219_v2   ;;  %v78_v31 = vsel %vm34_vm0, %v74_v19, 0.0  ;;  %v85_v32 = vsel %vm34_vm0, %v75_v20, 0.0 }
   0xe   :  { %v37_v34 = vadd.f32 %v36_v25, %v35_v21  ;;  %v79_v35 = vrot.slane %v78_v31, 4  ;;  %v44_v39 = vadd.f32 %v43_v26, %v42_v22  ;;  %v86_v40 = vrot.slane %v85_v32, 4 }
   0xf   :  { %v65_v47 = vsub.f32 1.0, %v64_v38 }
  0x10   :  { %v38_v45 = vrot.slane %v37_v34, 2  ;;  %v80_v46 = vadd.f32 %v79_v35, %v78_v31  ;;  %v45_v48 = vrot.slane %v44_v39, 2  ;;  %v87_v49 = vadd.f32 %v86_v40, %v85_v32 }
  0x11   :  { %v66_v56 = vmul.f32 %v1122_v28, %v65_v47 }
  0x12   :  { %v1243_v17 = vld.sshfl [vmem:[#allocation1] sm:$0xff pattern:$0x75316420]  ;;  %v1245_v18 = vld.sshfl [vmem:[#allocation1 + $0x8] sm:$0xff pattern:$0x75316420]  ;;  %v39_v54 = vadd.f32 %v38_v45, %v37_v34  ;;  %v46_v57 = vadd.f32 %v45_v48, %v44_v39 }
  0x13   :  { %1083 = vset.pattern.permute.xlu1 %v1150_v7  ;;  %1085 = vset.pattern.permute.xlu0 %v1151_v8  ;;  %v49_v23 = vsel %vm34_vm0, %v1243_v17, 0.0  ;;  %v56_v24 = vsel %vm34_vm0, %v1245_v18, 0.0  ;;  %v76_v29 = vmul.f32 %v1243_v17, %v1243_v17  ;;  %v77_v30 = vmul.f32 %v1245_v18, %v1245_v18 }
  0x14   :  { %240 = vperm.xlu1 %1083, %v1219_v2   ;;  %264 = vperm.xlu0 %1085, %v1219_v2   ;;  %v50_v27 = vrot.slane %v49_v23, 4  ;;  %v57_v33 = vrot.slane %v56_v24, 4  ;;  %v81_v55 = vrot.slane %v80_v46, 2  ;;  %v88_v58 = vrot.slane %v87_v49, 2 }
  0x15   :  { %1084 = vset.pattern.permute.xlu2 %v1152_v9  ;;  %v92_v36 = vsel %vm34_vm0, %v76_v29, 0.0  ;;  %v99_v37 = vsel %vm34_vm0, %v77_v30, 0.0  ;;  %v40_v63 = vrot.slane %v39_v54, 1  ;;  %v67_v4 = vadd.f32 %v1122_v28, %v66_v56 }
  0x16   :  { %256 = vperm.xlu2 %1084, %v1219_v2   ;;  %v51_v41 = vadd.f32 %v50_v27, %v49_v23  ;;  %v93_v42 = vrot.slane %v92_v36, 4  ;;  %v58_v43 = vadd.f32 %v57_v33, %v56_v24  ;;  %v100_v44 = vrot.slane %v99_v37, 4 }
  0x17   :  { %v82_v1 = vadd.f32 %v81_v55, %v80_v46  ;;  %v47_v5 = vrot.slane %v46_v57, 1  ;;  %v89_v6 = vadd.f32 %v88_v58, %v87_v49  ;;  %v1156_v48 = vmov 22  }
  0x18   :  { %v52_v50 = vrot.slane %v51_v41, 2  ;;  %v94_v51 = vadd.f32 %v93_v42, %v92_v36  ;;  %v59_v52 = vrot.slane %v58_v43, 2  ;;  %v101_v53 = vadd.f32 %v100_v44, %v99_v37 }
  0x19   :  { %v83_v12 = vrot.slane %v82_v1, 1  ;;  %v48_v16 = vadd.f32 %v47_v5, %v46_v57  ;;  %v90_v19 = vrot.slane %v89_v6, 1 }
  0x1a   :  { %v53_v59 = vadd.f32 %v52_v50, %v51_v41  ;;  %v95_v60 = vrot.slane %v94_v51, 2  ;;  %v60_v61 = vadd.f32 %v59_v52, %v58_v43  ;;  %v102_v62 = vrot.slane %v101_v53, 2 }
  0x1b   :  { %v84_v25 = vadd.f32 %v83_v12, %v82_v1  ;;  %v91_v27 = vadd.f32 %v90_v19, %v89_v6 }
  0x1c   :  { %1086 = vset.pattern.permute.xlu0 %v1153_v11  ;;  %v54_v7 = vrot.slane %v53_v59, 1  ;;  %v96_v8 = vadd.f32 %v95_v60, %v94_v51  ;;  %v61_v9 = vrot.slane %v60_v61, 1  ;;  %v103_v10 = vadd.f32 %v102_v62, %v101_v53 }
  0x1d   :  { %295 = vperm.xlu0 %1086, %v1219_v2   ;;  %v41_v11 = vadd.f32 %v40_v63, %v39_v54  ;;  %v1157_v62 = vmov 25   ;;  %v1158_v63 = vmov 23  }
  0x1e   :  { %v55_v20 = vadd.f32 %v54_v7, %v53_v59  ;;  %v97_v21 = vrot.slane %v96_v8, 1  ;;  %v62_v22 = vadd.f32 %v61_v9, %v60_v61  ;;  %v104_v23 = vrot.slane %v103_v10, 1  ;;  %1090 = vset.pattern.permute.xlu1 %v1157_v62 }
  0x1f   :  { %427 = vperm.xlu1 %1090, %v1219_v2  }
  0x20   :  { %v98_v30 = vadd.f32 %v97_v21, %v96_v8  ;;  %v105_v31 = vadd.f32 %v104_v23, %v103_v10 }
  0x25   :  { %1087 = vset.pattern.permute.xlu0 %v1154_v15  ;;  %v1267_v15 = vsel %vm68_vm1, %v1122_v28, %v67_v4 }
  0x26   :  { %328 = vperm.xlu0 %1087, %v1219_v2   ;;  %v1270_v24 = vmul.f32 %v1267_v15, %v41_v11  ;;  %v1273_v26 = vmul.f32 %v1267_v15, %v48_v16  ;;  %v1276_v29 = vmul.f32 %v1267_v15, %v55_v20  ;;  %v1279_v28 = vmul.f32 %v1267_v15, %v62_v22 }
  0x27   :  { %v106_v32 = vmul.f32 %v84_v25, %v1267_v15  ;;  %v107_v34 = vmul.f32 %v91_v27, %v1267_v15  ;;  %v108_v36 = vmul.f32 %v98_v30, %v1267_v15  ;;  %v109_v38 = vmul.f32 %v105_v31, %v1267_v15 }
  0x28   :  { %v110_v33 = vmul.f32 %v1270_v24, %v1270_v24  ;;  %v111_v35 = vmul.f32 %v1273_v26, %v1273_v26  ;;  %v112_v37 = vmul.f32 %v1276_v29, %v1276_v29  ;;  %v113_v39 = vmul.f32 %v1279_v28, %v1279_v28 }
  0x29   :  { %v162_v22 = vsub.f32 %v1238_v13, %v1270_v24  ;;  %v163_v23 = vsub.f32 %v1240_v14, %v1273_v26  ;;  %v164_v25 = vsub.f32 %v1243_v17, %v1276_v29  ;;  %v165_v27 = vsub.f32 %v1245_v18, %v1279_v28 }
  0x2a   :  { %v114_v40 = vsub.f32 %v106_v32, %v110_v33  ;;  %v115_v41 = vsub.f32 %v107_v34, %v111_v35  ;;  %v116_v42 = vsub.f32 %v108_v36, %v112_v37  ;;  %v117_v43 = vsub.f32 %v109_v38, %v113_v39 }
  0x2c   :  { %v118_v44 = vadd.f32 1e-06, %v114_v40  ;;  %v119_v45 = vadd.f32 1e-06, %v115_v41  ;;  %v120_v46 = vadd.f32 1e-06, %v116_v42 }
  0x2d   :  { %v121_v47 = vadd.f32 1e-06, %v117_v43 }
  0x2e   :  { %1123 = vrsqrt.f32 %v118_v44  ;;  %1088 = vset.pattern.permute.xlu0 %v1156_v48  ;;  %vm128_vm2 = vweird.f32 %v118_v44  ;;  %vm138_vm4 = vweird.f32 %v119_v45  ;;  %vm148_vm6 = vweird.f32 %v120_v46 }
  0x2f   :  { %1125 = vrsqrt.f32 %v119_v45  ;;  %361 = vperm.xlu0 %1088, %v1219_v2   ;;  %vm158_vm9 = vweird.f32 %v121_v47 }
  0x30   :  { %1127 = vrsqrt.f32 %v120_v46 }
  0x31   :  { %1129 = vrsqrt.f32 %v121_v47 }
  0x34   :  { %v1124_v49 = vpop.eup %1123 }
  0x35   :  { %v1126_v50 = vpop.eup %1125  ;;  %v123_v53 = vmul.f32 %v1124_v49, %v118_v44  ;;  %vm129_vm3 = vweird.f32 %v1124_v49 }
  0x36   :  { %v1128_v51 = vpop.eup %1127  ;;  %v133_v54 = vmul.f32 %v1126_v50, %v119_v45  ;;  %vm139_vm5 = vweird.f32 %v1126_v50  ;;  %vm1296_vm8 = vmor %vm128_vm2, %vm129_vm3 }
  0x37   :  { %v1130_v52 = vpop.eup %1129  ;;  %v143_v55 = vmul.f32 %v1128_v51, %v120_v46  ;;  %v124_v57 = vmul.f32 %v1124_v49, %v123_v53  ;;  %1089 = vset.pattern.permute.xlu0 %v1158_v63  ;;  %vm149_vm7 = vweird.f32 %v1128_v51  ;;  %vm1300_vm11 = vmor %vm138_vm4, %vm139_vm5 }
  0x38   :  { %v153_v56 = vmul.f32 %v1130_v52, %v121_v47  ;;  %v134_v58 = vmul.f32 %v1126_v50, %v133_v54  ;;  %394 = vperm.xlu0 %1089, %v1219_v2   ;;  %vm159_vm10 = vweird.f32 %v1130_v52  ;;  %vm150_vm12 = vmor %vm148_vm6, %vm149_vm7  ;;  %v1159_v47 = vmov 26  }
  0x39   :  { %v144_v59 = vmul.f32 %v1128_v51, %v143_v55  ;;  %v125_v61 = vmul.f32 0.5, %v124_v57  ;;  %vm160_vm13 = vmor %vm158_vm9, %vm159_vm10 }
  0x3a   :  { %v154_v60 = vmul.f32 %v1130_v52, %v153_v56  ;;  %v135_v1 = vmul.f32 0.5, %v134_v58 }
  0x3b   :  { %v145_v4 = vmul.f32 0.5, %v144_v59  ;;  %v126_v6 = vsub.f32 1.5, %v125_v61 }
  0x3c   :  { %v155_v5 = vmul.f32 0.5, %v154_v60  ;;  %v136_v7 = vsub.f32 1.5, %v135_v1 }
  0x3d   :  { %v146_v8 = vsub.f32 1.5, %v145_v4  ;;  %v127_v12 = vmul.f32 %v1124_v49, %v126_v6 }
  0x3e   :  { %v156_v9 = vsub.f32 1.5, %v155_v5  ;;  %v137_v16 = vmul.f32 %v1126_v50, %v136_v7 }
  0x3f   :  { %v147_v19 = vmul.f32 %v1128_v51, %v146_v8  ;;  %v131_v31 = vsel %vm1296_vm8, %v1124_v49, %v127_v12  ;;  %vm572_vm8 = vcmask 7168  }
  0x40   :  { %v157_v20 = vmul.f32 %v1130_v52, %v156_v9  ;;  %v141_v32 = vsel %vm1300_vm11, %v1126_v50, %v137_v16  ;;  %v166_v35 = vmul.f32 %v162_v22, %v131_v31  ;;  %1091 = vset.pattern.permute.xlu0 %v1159_v47 }
  0x41   :  { %v151_v33 = vsel %vm150_vm12, %v1128_v51, %v147_v19  ;;  %v167_v24 = vmul.f32 %v163_v23, %v141_v32 }
  0x42   :  { %v161_v34 = vsel %vm160_vm13, %v1130_v52, %v157_v20  ;;  %v168_v36 = vmul.f32 %v164_v25, %v151_v33 }
  0x43   :  { %v169_v37 = vmul.f32 %v165_v27, %v161_v34 }
  0x5e   :  { %v209_v26 = vpop.permute.xlu2 %208 }
  0x67   :  { %v225_v58 = vpop.permute.xlu2 %224 }
  0x74   :  { %v173_v21 = vpop.permute.xlu0 %172  ;;  %v189_v30 = vpop.permute.xlu1 %188 }
  0x75   :  { %v175_v38 = vmul.f32 %v173_v21, %v166_v35  ;;  %v176_v39 = vmul.f32 %v173_v21, %v167_v24  ;;  %v177_v17 = vmul.f32 %v173_v21, %v168_v36  ;;  %v178_v29 = vmul.f32 %v173_v21, %v169_v37 }
  0x7d   :  { %v181_v40 = vpop.permute.xlu0 %180  ;;  %v201_v18 = vpop.permute.xlu1 %200 }
  0x7e   :  { %v183_v28 = vadd.f32 %v181_v40, %v175_v38  ;;  %v184_v41 = vadd.f32 %v181_v40, %v176_v39  ;;  %v185_v42 = vadd.f32 %v181_v40, %v177_v17  ;;  %v186_v43 = vadd.f32 %v181_v40, %v178_v29 }
  0x7f   :  { %v1165_v29 = vmov 27   ;;  %v1168_v40 = vmov 28  }
  0x80   :  { %v191_v44 = vperm.slane %v183_v28, 0  ;;  %v192_v45 = vperm.slane %v184_v41, 0  ;;  %v194_v46 = vperm.slane %v186_v43, 0  ;;  %v193_v48 = vperm.slane %v185_v42, 0  ;;  %1093 = vset.pattern.permute.xlu1 %v1168_v40 }
  0x81   :  { %v211_v49 = vperm.slane %v183_v28, 1  ;;  %v212_v50 = vperm.slane %v184_v41, 1  ;;  %v227_v60 = vperm.slane %v183_v28, 2  ;;  %v228_v61 = vperm.slane %v184_v41, 2 }
  0x82   :  { %v195_v51 = vmul.f32 %v191_v44, %v189_v30  ;;  %v196_v52 = vmul.f32 %v192_v45, %v189_v30  ;;  %v198_v53 = vmul.f32 %v194_v46, %v189_v30  ;;  %v197_v59 = vmul.f32 %v193_v48, %v189_v30 }
  0x83   :  { %v215_v56 = vmul.f32 %v211_v49, %v209_v26  ;;  %v216_v57 = vmul.f32 %v212_v50, %v209_v26  ;;  %v214_v62 = vperm.slane %v186_v43, 1  ;;  %v213_v4 = vperm.slane %v185_v42, 1 }
  0x84   :  { %v203_v54 = vadd.f32 %v201_v18, %v195_v51  ;;  %v204_v55 = vadd.f32 %v201_v18, %v196_v52  ;;  %v231_v5 = vmul.f32 %v227_v60, %v225_v58  ;;  %v232_v6 = vmul.f32 %v228_v61, %v225_v58  ;;  %v1375_v51 = vld [vmem:[%s1687_s1] sm:$0xff]  ;;  %v1380_v52 = vld [vmem:[%s1687_s1 + $0x8] sm:$0xff] }
  0x85   :  { %v206_v8 = vadd.f32 %v201_v18, %v198_v53  ;;  %v243_v9 = vperm.slane %v183_v28, 3  ;;  %v244_v10 = vperm.slane %v184_v41, 3  ;;  %v205_v11 = vadd.f32 %v201_v18, %v197_v59  ;;  %v257_v18 = vpop.permute.xlu2 %256 }
  0x86   :  { %v219_v63 = vadd.f32 %v215_v56, %v203_v54  ;;  %v220_v1 = vadd.f32 %v216_v57, %v204_v55  ;;  %v241_v7 = vpop.permute.xlu1 %240  ;;  %v218_v19 = vmul.f32 %v214_v62, %v209_v26  ;;  %v230_v20 = vperm.slane %v186_v43, 2  ;;  %v265_v48 = vpop.permute.xlu0 %264 }
  0x87   :  { %v247_v21 = vmul.f32 %v243_v9, %v241_v7  ;;  %v248_v22 = vmul.f32 %v244_v10, %v241_v7  ;;  %v217_v23 = vmul.f32 %v213_v4, %v209_v26  ;;  %v229_v25 = vperm.slane %v185_v42, 2  ;;  %v1396_v4 = vld [vmem:[%s1687_s1 + $0x10] sm:$0xff] }
  0x88   :  { %v235_v12 = vadd.f32 %v231_v5, %v219_v63  ;;  %v236_v16 = vadd.f32 %v232_v6, %v220_v1  ;;  %v222_v27 = vadd.f32 %v218_v19, %v206_v8  ;;  %v234_v33 = vmul.f32 %v230_v20, %v225_v58  ;;  %v1391_v1 = vld [vmem:[%s1687_s1 + $0x18] sm:$0xff] }
  0x89   :  { %v221_v32 = vadd.f32 %v217_v23, %v205_v11  ;;  %v246_v34 = vperm.slane %v186_v43, 3  ;;  %v233_v35 = vmul.f32 %v229_v25, %v225_v58  ;;  %v245_v24 = vperm.slane %v185_v42, 3 }
  0x8a   :  { %v1316_v30 = vadd.f32 %v247_v21, %v235_v12  ;;  %v1318_v31 = vadd.f32 %v248_v22, %v236_v16  ;;  %v238_v36 = vadd.f32 %v234_v33, %v222_v27  ;;  %v279_v43 = vlaneseq }
  0x8b   :  { %v250_v37 = vmul.f32 %v246_v34, %v241_v7  ;;  %v237_v26 = vadd.f32 %v233_v35, %v221_v32  ;;  %v249_v38 = vmul.f32 %v245_v24, %v241_v7  ;;  %v286_v53 = vperm.slane %v1375_v51, 0 }
  0x8c   :  { %273 = vrot.lane.b32.xlu2 %v1318_v31, %s1160_s0  ;;  %438 = vrot.lane.b32.xlu0 %v1316_v30, %s1161_s18  ;;  %v1367_v45 = vand.u32 127, %v279_v43  ;;  %v287_v54 = vperm.slane %v1380_v52, 0  ;;  %v259_v62 = vmul.f32 %v257_v18, %v1316_v30  ;;  %v260_v63 = vmul.f32 %v257_v18, %v1318_v31 }
  0x8d   :  { %271 = vrot.lane.b32.xlu1 %v1316_v30, %s1160_s0  ;;  %v1324_v39 = vadd.f32 %v250_v37, %v238_v36  ;;  %v1326_v17 = vadd.f32 %v249_v38, %v237_v26  ;;  %v319_v5 = vperm.slane %v1375_v51, 1  ;;  %v320_v6 = vperm.slane %v1380_v52, 1 }
  0x8e   :  { %vm281_vm14 = vcmp.lt.s32.totalorder %v1367_v45, 17  ;;  %vm314_vm15 = vcmp.lt.s32.totalorder %v1367_v45, 16  ;;  %v288_v9 = vperm.slane %v1396_v4, 0  ;;  %v289_v10 = vperm.slane %v1391_v1, 0 }
  0x8f   :  { %v296_v57 = vpop.permute.xlu0 %295  ;;  %v267_v12 = vadd.f32 %v265_v48, %v259_v62  ;;  %v268_v16 = vadd.f32 %v265_v48, %v260_v63  ;;  %v261_v35 = vmul.f32 %v257_v18, %v1326_v17  ;;  %v262_v24 = vmul.f32 %v257_v18, %v1324_v39 }
  0x90   :  { %v321_v26 = vperm.slane %v1396_v4, 1  ;;  %v322_v38 = vperm.slane %v1391_v1, 1  ;;  %vm347_vm1 = vcmp.lt.s32.totalorder %v1367_v45, 15  ;;  %vm446_vm2 = vcmp.lt.s32.totalorder %v1367_v45, 113 }
  0x91   :  { %v1365_v42 = vpop.permute.xlu1 %427  ;;  %vm380_vm3 = vcmp.lt.s32.totalorder %v1367_v45, 1  ;;  %vm479_vm4 = vcmp.lt.s32.totalorder %v1367_v45, 112  ;;  %vm413_vm5 = vcmp.lt.s32.totalorder %v1367_v45, 127  ;;  %vm512_vm6 = vcmp.lt.s32.totalorder %v1367_v45, 111 }
  0x94   :  { %277 = vrot.lane.b32.xlu2 %v1324_v39, %s1160_s0  ;;  %444 = vrot.lane.b32.xlu0 %v1324_v39, %s1161_s18 }
  0x95   :  { %275 = vrot.lane.b32.xlu1 %v1326_v17, %s1160_s0 }
  0x98   :  { %v329_v25 = vpop.permute.xlu0 %328 }
  0x9c   :  { %308 = vrot.lane.b32.xlu2 %v1318_v31, %s1162_s19  ;;  %473 = vrot.lane.b32.xlu0 %v1318_v31, %s1163_s20 }
  0x9d   :  { %306 = vrot.lane.b32.xlu1 %v1316_v30, %s1162_s19 }
  0xa1   :  { %v362_v63 = vpop.permute.xlu0 %361 }
  0xa4   :  { %312 = vrot.lane.b32.xlu2 %v1324_v39, %s1162_s19  ;;  %460 = vperm.xlu0 %1091, %v1219_v2  }
  0xa5   :  { %310 = vrot.lane.b32.xlu1 %v1326_v17, %s1162_s19 }
  0xac   :  { %341 = vrot.lane.b32.xlu2 %v1318_v31, %s1164_s21  ;;  %1092 = vset.pattern.permute.xlu0 %v1165_v29 }
  0xad   :  { %339 = vrot.lane.b32.xlu1 %v1316_v30, %s1164_s21  ;;  %493 = vperm.xlu0 %1092, %v1219_v2  }
  0xb4   :  { %345 = vrot.lane.b32.xlu2 %v1324_v39, %s1164_s21 }
  0xb5   :  { %343 = vrot.lane.b32.xlu1 %v1326_v17, %s1164_s21 }
  0xbc   :  { %374 = vrot.lane.b32.xlu2 %v1318_v31, %s1166_s22 }
  0xbd   :  { %372 = vrot.lane.b32.xlu1 %v1316_v30, %s1166_s22 }
  0xc4   :  { %378 = vrot.lane.b32.xlu2 %v1324_v39, %s1166_s22 }
  0xc5   :  { %376 = vrot.lane.b32.xlu1 %v1326_v17, %s1166_s22 }
  0xcc   :  { %407 = vrot.lane.b32.xlu2 %v1318_v31, %s1167_s23 }
  0xcd   :  { %405 = vrot.lane.b32.xlu1 %v1316_v30, %s1167_s23 }
  0xd4   :  { %411 = vrot.lane.b32.xlu2 %v1324_v39, %s1167_s23 }
  0xd5   :  { %409 = vrot.lane.b32.xlu1 %v1326_v17, %s1167_s23 }
  0xdc   :  { %442 = vrot.lane.b32.xlu2 %v1326_v17, %s1161_s18 }
  0xdd   :  { %440 = vrot.lane.b32.xlu1 %v1318_v31, %s1161_s18 }
  0xe4   :  { %471 = vrot.lane.b32.xlu2 %v1316_v30, %s1163_s20 }
  0xe5   :  { %475 = vrot.lane.b32.xlu1 %v1326_v17, %s1163_s20 }
  0xe6   :  { %v274_v28 = vpop.permute.xlu2 %273 }
  0xec   :  { %477 = vrot.lane.b32.xlu2 %v1324_v39, %s1163_s20 }
  0xed   :  { %504 = vrot.lane.b32.xlu1 %v1316_v30, %s1169_s24 }
  0xee   :  { %v278_v41 = vpop.permute.xlu2 %277 }
  0xf4   :  { %506 = vrot.lane.b32.xlu2 %v1318_v31, %s1169_s24 }
  0xf5   :  { %508 = vrot.lane.b32.xlu1 %v1326_v17, %s1169_s24 }
  0xf6   :  { %v309_v44 = vpop.permute.xlu2 %308 }
  0xfc   :  { %510 = vrot.lane.b32.xlu2 %v1324_v39, %s1169_s24 }
  0xfd   :  { %526 = vperm.xlu1 %1093, %v1219_v2  }
  0xfe   :  { %v313_v46 = vpop.permute.xlu2 %312 }
  0xff   :  { %v272_v47 = vpop.permute.xlu1 %271 }
 0x100   :  { %v284_v49 = vsel %vm281_vm14, %v272_v47, %v274_v28  ;;  %v285_v50 = vsel %vm281_vm14, %v278_v41, %v272_v47  ;;  %v269_v47 = vadd.f32 %v265_v48, %v261_v35 }
 0x101   :  { %v290_v60 = vmul.f32 %v286_v53, %v285_v50  ;;  %v291_v61 = vmul.f32 %v287_v54, %v284_v49  ;;  %v270_v49 = vadd.f32 %v265_v48, %v262_v24  ;;  %v1170_v24 = vmov 8  }
 0x102   :  { %1094 = vset.pattern.permute.xlu0 %v1170_v24 }
 0x103   :  { %v298_v7 = vmul.f32 %v296_v57, %v290_v60  ;;  %v299_v8 = vmul.f32 %v296_v57, %v291_v61  ;;  %575 = vperm.xlu0 %1094, %v1219_v2  }
 0x105   :  { %v302_v27 = vadd.f32 %v298_v7, %v267_v12  ;;  %v303_v30 = vadd.f32 %v299_v8, %v268_v16 }
 0x106   :  { %v1384_v55 = vpop.permute.xlu2 %341 }
 0x107   :  { %v276_v56 = vpop.permute.xlu1 %275 }
 0x108   :  { %v282_v58 = vsel %vm281_vm14, %v276_v56, %v278_v41  ;;  %v283_v59 = vsel %vm281_vm14, %v274_v28, %v276_v56 }
 0x109   :  { %v292_v31 = vmul.f32 %v288_v9, %v283_v59  ;;  %v293_v32 = vmul.f32 %v289_v10, %v282_v58  ;;  %v353_v59 = vperm.slane %v1380_v52, 2  ;;  %v354_v10 = vperm.slane %v1396_v4, 2 }
 0x10b   :  { %v300_v29 = vmul.f32 %v296_v57, %v292_v31  ;;  %v301_v40 = vmul.f32 %v296_v57, %v293_v32 }
 0x10d   :  { %v304_v18 = vadd.f32 %v300_v29, %v269_v47  ;;  %v305_v53 = vadd.f32 %v301_v40, %v270_v49 }
 0x10e   :  { %v1403_v19 = vpop.permute.xlu2 %345 }
 0x10f   :  { %v307_v11 = vpop.permute.xlu1 %306 }
 0x110   :  { %v317_v20 = vsel %vm314_vm15, %v307_v11, %v309_v44  ;;  %v318_v21 = vsel %vm314_vm15, %v313_v46, %v307_v11 }
 0x111   :  { %v323_v22 = vmul.f32 %v319_v5, %v318_v21  ;;  %v324_v23 = vmul.f32 %v320_v6, %v317_v20  ;;  %v1438_v21 = vpop.permute.xlu0 %394 }
 0x113   :  { %v331_v33 = vmul.f32 %v329_v25, %v323_v22  ;;  %v332_v34 = vmul.f32 %v329_v25, %v324_v23 }
 0x115   :  { %v335_v36 = vadd.f32 %v331_v33, %v302_v27  ;;  %v336_v37 = vadd.f32 %v332_v34, %v303_v30 }
 0x116   :  { %v1417_v39 = vpop.permute.xlu2 %374 }
 0x117   :  { %v311_v28 = vpop.permute.xlu1 %310 }
 0x118   :  { %v315_v41 = vsel %vm314_vm15, %v311_v28, %v313_v46  ;;  %v316_v43 = vsel %vm314_vm15, %v309_v44, %v311_v28  ;;  %v352_v46 = vperm.slane %v1375_v51, 2  ;;  %v1171_v28 = vmov 34  }
 0x119   :  { %v325_v17 = vmul.f32 %v321_v26, %v316_v43  ;;  %v326_v50 = vmul.f32 %v322_v38, %v315_v41  ;;  %v1444_v27 = vpop.permute.xlu0 %438  ;;  %v355_v26 = vperm.slane %v1391_v1, 2  ;;  %v454_v38 = vperm.slane %v1391_v1, 5  ;;  %1095 = vset.pattern.permute.xlu0 %v1171_v28 }
 0x11a   :  { %v385_v41 = vperm.slane %v1375_v51, 3  ;;  %581 = vperm.xlu0 %1095, %v1219_v2  }
 0x11b   :  { %v333_v54 = vmul.f32 %v329_v25, %v325_v17  ;;  %v334_v56 = vmul.f32 %v329_v25, %v326_v50  ;;  %v386_v50 = vperm.slane %v1380_v52, 3 }
 0x11d   :  { %v337_v57 = vadd.f32 %v333_v54, %v304_v18  ;;  %v1420_v58 = vadd.f32 %v334_v56, %v305_v53  ;;  %v453_v18 = vperm.slane %v1396_v4, 5 }
 0x11e   :  { %v379_v7 = vpop.permute.xlu2 %378 }
 0x11f   :  { %v340_v44 = vpop.permute.xlu1 %339 }
 0x120   :  { %v350_v48 = vsel %vm347_vm1, %v340_v44, %v1384_v55  ;;  %v351_v60 = vsel %vm347_vm1, %v1403_v19, %v340_v44  ;;  %v388_v44 = vperm.slane %v1391_v1, 3 }
 0x121   :  { %v356_v61 = vmul.f32 %v352_v46, %v351_v60  ;;  %v357_v62 = vmul.f32 %v353_v59, %v350_v48  ;;  %v445_v33 = vpop.permute.xlu0 %444  ;;  %v387_v46 = vperm.slane %v1396_v4, 3  ;;  %v484_v60 = vperm.slane %v1375_v51, 6 }
 0x122   :  { %v450_v40 = vsel %vm446_vm2, %v445_v33, %v1444_v27 }
 0x123   :  { %v364_v5 = vmul.f32 %v362_v63, %v356_v61  ;;  %v365_v6 = vmul.f32 %v362_v63, %v357_v62  ;;  %v458_v17 = vmul.f32 %v454_v38, %v450_v40  ;;  %v418_v61 = vperm.slane %v1375_v51, 4 }
 0x124   :  { %v421_v62 = vperm.slane %v1391_v1, 4  ;;  %v452_v38 = vperm.slane %v1380_v52, 5 }
 0x125   :  { %v1430_v8 = vadd.f32 %v364_v5, %v335_v36  ;;  %v1432_v9 = vadd.f32 %v365_v6, %v336_v37  ;;  %v487_v6 = vperm.slane %v1391_v1, 6 }
 0x126   :  { %v1442_v23 = vpop.permute.xlu2 %407 }
 0x127   :  { %v344_v11 = vpop.permute.xlu1 %343 }
 0x128   :  { %v349_v12 = vsel %vm347_vm1, %v1384_v55, %v344_v11  ;;  %v348_v29 = vsel %vm347_vm1, %v344_v11, %v1403_v19 }
 0x129   :  { %v358_v16 = vmul.f32 %v354_v10, %v349_v12  ;;  %v1448_v55 = vpop.permute.xlu0 %473  ;;  %v359_v47 = vmul.f32 %v355_v26, %v348_v29  ;;  %v1172_v12 = vmov 10   ;;  %v420_v26 = vperm.slane %v1396_v4, 4 }
 0x12a   :  { %1097 = vset.pattern.permute.xlu0 %v1172_v12 }
 0x12b   :  { %v366_v20 = vmul.f32 %v362_v63, %v358_v16  ;;  %v367_v59 = vmul.f32 %v362_v63, %v359_v47  ;;  %v1173_v16 = vmov 11   ;;  %593 = vperm.xlu0 %1097, %v1219_v2  }
 0x12c   :  { %1098 = vset.pattern.permute.xlu1 %v1173_v16 }
 0x12d   :  { %v1440_v22 = vadd.f32 %v366_v20, %v337_v57  ;;  %v371_v20 = vadd.f32 %v367_v59, %v1420_v58  ;;  %v451_v58 = vperm.slane %v1375_v51, 5 }
 0x12e   :  { %v412_v31 = vpop.permute.xlu2 %411 }
 0x12f   :  { %v373_v25 = vpop.permute.xlu1 %372 }
 0x130   :  { %v384_v49 = vsel %vm380_vm3, %v379_v7, %v373_v25  ;;  %v383_v56 = vsel %vm380_vm3, %v373_v25, %v1417_v39 }
 0x131   :  { %v1467_v43 = vpop.permute.xlu0 %460  ;;  %v389_v57 = vmul.f32 %v385_v41, %v384_v49  ;;  %v390_v5 = vmul.f32 %v386_v50, %v383_v56  ;;  %v485_v56 = vperm.slane %v1380_v52, 6 }
 0x132   :  { %v1474_v54 = vmul.f32 %v1467_v43, %v458_v17 }
 0x133   :  { %v397_v63 = vmul.f32 %v1438_v21, %v389_v57  ;;  %v486_v57 = vperm.slane %v1396_v4, 6  ;;  %1101 = vset.pattern.permute.xlu0 %v1144_v0  ;;  %v518_v0 = vperm.slane %v1380_v52, 7 }
 0x135   :  { %v401_v28 = vadd.f32 %v397_v63, %v1430_v8 }
 0x136   :  { %v1446_v34 = vpop.permute.xlu2 %442 }
 0x137   :  { %v377_v30 = vpop.permute.xlu1 %376  ;;  %v447_v25 = vsel %vm446_vm2, %v1446_v34, %v445_v33  ;;  %v398_v33 = vmul.f32 %v1438_v21, %v390_v5 }
 0x138   :  { %v382_v48 = vsel %vm380_vm3, %v1417_v39, %v377_v30  ;;  %v381_v10 = vsel %vm380_vm3, %v377_v30, %v379_v7  ;;  %v419_v39 = vperm.slane %v1380_v52, 4 }
 0x139   :  { %v391_v11 = vmul.f32 %v387_v46, %v382_v48  ;;  %v392_v29 = vmul.f32 %v388_v44, %v381_v10  ;;  %v494_v12 = vpop.permute.xlu0 %493 }
 0x13b   :  { %v399_v41 = vmul.f32 %v1438_v21, %v391_v11  ;;  %v400_v46 = vmul.f32 %v1438_v21, %v392_v29 }
 0x13d   :  { %v404_v10 = vadd.f32 %v400_v46, %v371_v20 }
 0x13e   :  { %v1451_v36 = vpop.permute.xlu2 %471 }
 0x13f   :  { %v406_v32 = vpop.permute.xlu1 %405 }
 0x140   :  { %v416_v24 = vsel %vm413_vm5, %v406_v32, %v1442_v23  ;;  %v417_v7 = vsel %vm413_vm5, %v412_v31, %v406_v32 }
 0x141   :  { %v422_v47 = vmul.f32 %v418_v61, %v416_v24  ;;  %v425_v17 = vmul.f32 %v421_v62, %v417_v7  ;;  %v403_v61 = vadd.f32 %v399_v41, %v1440_v22 }
 0x143   :  { %v433_v21 = vmul.f32 %v1365_v42, %v425_v17 }
 0x145   :  { %v437_v16 = vadd.f32 %v433_v21, %v404_v10  ;;  %v1176_v10 = vmov 256.0  }
 0x146   :  { %v478_v19 = vpop.permute.xlu2 %477  ;;  %1131 = vrcp.f32 %v1176_v10 }
 0x147   :  { %v410_v35 = vpop.permute.xlu1 %409 }
 0x148   :  { %v414_v30 = vsel %vm413_vm5, %v410_v35, %v412_v31  ;;  %v415_v40 = vsel %vm413_vm5, %v1442_v23, %v410_v35  ;;  %v457_v31 = vmul.f32 %v453_v18, %v447_v25  ;;  %v483_v23 = vsel %vm479_vm4, %v478_v19, %v1451_v36 }
 0x149   :  { %v424_v50 = vmul.f32 %v420_v26, %v414_v30  ;;  %v423_v35 = vmul.f32 %v419_v39, %v415_v40  ;;  %v402_v18 = vadd.f32 %v398_v33, %v1432_v9  ;;  %v430_v9 = vmul.f32 %v1365_v42, %v422_v47 }
 0x14a   :  { %v465_v48 = vmul.f32 %v1467_v43, %v457_v31 }
 0x14b   :  { %v434_v39 = vadd.f32 %v430_v9, %v401_v28  ;;  %v1174_v9 = vmov 9  }
 0x14c   :  { %1096 = vset.pattern.permute.xlu2 %v1174_v9 }
 0x14e   :  { %v507_v49 = vpop.permute.xlu2 %506 }
 0x14f   :  { %v1453_v37 = vpop.permute.xlu1 %440 }
 0x150   :  { %v449_v2 = vsel %vm446_vm2, %v1444_v27, %v1453_v37  ;;  %v448_v8 = vsel %vm446_vm2, %v1453_v37, %v1446_v34  ;;  %v482_v34 = vsel %vm479_vm4, %v1451_v36, %v1448_v55  ;;  %v491_v37 = vmul.f32 %v487_v6, %v483_v23 }
 0x151   :  { %v455_v27 = vmul.f32 %v451_v58, %v449_v2  ;;  %v456_v62 = vmul.f32 %v452_v38, %v448_v8  ;;  %v520_v36 = vperm.slane %v1391_v1, 7  ;;  %v488_v6 = vmul.f32 %v484_v60, %v482_v34 }
 0x152   :  { %v499_v25 = vmul.f32 %v494_v12, %v491_v37 }
 0x153   :  { %v463_v5 = vmul.f32 %v1467_v43, %v455_v27  ;;  %v464_v20 = vmul.f32 %v1467_v43, %v456_v62  ;;  %v496_v38 = vmul.f32 %v494_v12, %v488_v6  ;;  %v470_v43 = vadd.f32 %v1474_v54, %v437_v16 }
 0x155   :  { %v467_v7 = vadd.f32 %v463_v5, %v434_v39  ;;  %v503_v41 = vadd.f32 %v499_v25, %v470_v43 }
 0x156   :  { %v511_v30 = vpop.permute.xlu2 %510 }
 0x157   :  { %v476_v53 = vpop.permute.xlu1 %475 }
 0x158   :  { %v480_v59 = vsel %vm479_vm4, %v476_v53, %v478_v19  ;;  %v481_v44 = vsel %vm479_vm4, %v1448_v55, %v476_v53  ;;  %v432_v19 = vmul.f32 %v1365_v42, %v424_v50  ;;  %v431_v53 = vmul.f32 %v1365_v42, %v423_v35 }
 0x159   :  { %v489_v22 = vmul.f32 %v485_v56, %v481_v44  ;;  %v490_v63 = vmul.f32 %v486_v57, %v480_v59  ;;  %v517_v55 = vperm.slane %v1375_v51, 7  ;;  %v519_v42 = vperm.slane %v1396_v4, 7 }
 0x15a   :  { %v436_v24 = vadd.f32 %v432_v19, %v403_v61  ;;  %v435_v26 = vadd.f32 %v431_v53, %v402_v18 }
 0x15b   :  { %v497_v58 = vmul.f32 %v494_v12, %v489_v22  ;;  %v498_v1 = vmul.f32 %v494_v12, %v490_v63  ;;  %v1583_v22 = vld [vmem:[%s1685_s2] sm:$0xff]  ;;  %v1175_v63 = vmov 35  }
 0x15c   :  { %v468_v33 = vadd.f32 %v464_v20, %v435_v26  ;;  %v469_v29 = vadd.f32 %v465_v48, %v436_v24 }
 0x15e   :  { %v501_v47 = vadd.f32 %v497_v58, %v468_v33  ;;  %v502_v17 = vadd.f32 %v498_v1, %v469_v29 }
 0x15f   :  { %v505_v32 = vpop.permute.xlu1 %504 }
 0x160   :  { %v515_v51 = vsel %vm512_vm6, %v505_v32, %v507_v49  ;;  %v516_v60 = vsel %vm512_vm6, %v511_v30, %v505_v32  ;;  %v500_v32 = vadd.f32 %v496_v38, %v467_v7 }
 0x161   :  { %v521_v40 = vmul.f32 %v517_v55, %v515_v51  ;;  %v524_v2 = vmul.f32 %v520_v36, %v516_v60  ;;  %v1132_v55 = vpop.eup %1131  ;;  %v1177_v36 = vmov 15  }
 0x162   :  { %v559_v6 = vmul.f32 256.0, %v1132_v55  ;;  %vm563_vm7 = vweird.f32 %v1132_v55 }
 0x164   :  { %v560_v39 = vsub.f32 1.0, %v559_v6 }
 0x166   :  { %v561_v12 = vmul.f32 %v1132_v55, %v560_v39 }
 0x167   :  { %v509_v11 = vpop.permute.xlu1 %508 }
 0x168   :  { %v513_v52 = vsel %vm512_vm6, %v509_v11, %v511_v30  ;;  %v514_v4 = vsel %vm512_vm6, %v507_v49, %v509_v11  ;;  %v1178_v11 = vmov 12  }
 0x169   :  { %v522_v28 = vmul.f32 %v518_v0, %v514_v4  ;;  %v523_v31 = vmul.f32 %v519_v42, %v513_v52  ;;  %v562_v0 = vadd.f32 %v1132_v55, %v561_v12  ;;  %v1179_v52 = vmov 36  }
 0x16b   :  { %v564_v16 = vsel %vm563_vm7, %v1132_v55, %v562_v0 }
 0x16f   :  { %v527_v50 = vpop.permute.xlu1 %526 }
 0x170   :  { %v529_v56 = vmul.f32 %v527_v50, %v521_v40  ;;  %v530_v57 = vmul.f32 %v527_v50, %v522_v28  ;;  %v531_v23 = vmul.f32 %v527_v50, %v523_v31  ;;  %v532_v35 = vmul.f32 %v527_v50, %v524_v2 }
 0x171   :  { %v1182_v50 = vmov 14  }
 0x172   :  { %v533_v45 = vadd.f32 %v529_v56, %v500_v32  ;;  %v534_v49 = vadd.f32 %v530_v57, %v501_v47  ;;  %v535_v8 = vadd.f32 %v531_v23, %v502_v17  ;;  %v536_v27 = vadd.f32 %v532_v35, %v503_v41 }
 0x173   :  { %v1180_v41 = vmov 31   ;;  %v1181_v17 = vmov 6   ;;  %v1183_v32 = vmov 13   ;;  %v1184_v56 = vmov 38  }
 0x174   :  { %v541_v54 = vrot.slane %v533_v45, 4  ;;  %v542_v18 = vrot.slane %v534_v49, 4  ;;  %v543_v46 = vrot.slane %v535_v8, 4  ;;  %v544_v59 = vrot.slane %v536_v27, 4 }
 0x175   :  { %v576_v42 = vpop.permute.xlu0 %575  ;;  %v1185_v57 = vmov 39   ;;  %v1186_v23 = vmov 37   ;;  %v1187_v35 = vmov 18  }
 0x176   :  { %v1564_v44 = vmul.f32 %v541_v54, %v533_v45  ;;  %v1566_v48 = vmul.f32 %v542_v18, %v534_v49  ;;  %v1568_v61 = vmul.f32 %v543_v46, %v535_v8  ;;  %v1570_v34 = vmul.f32 %v544_v59, %v536_v27 }
 0x177   :  { %v1188_v45 = vmov 7   ;;  %v1189_v49 = vmov 4   ;;  %v1190_v8 = vmov 19   ;;  %v1191_v27 = vmov 5  }
 0x178   :  { %v553_v21 = vsel %vm34_vm0, %v1564_v44, 0.0  ;;  %v554_v37 = vsel %vm34_vm0, %v1566_v48, 0.0  ;;  %v566_v19 = vsel %vm34_vm0, %v1568_v61, 0.0  ;;  %v567_v62 = vsel %vm34_vm0, %v1570_v34, 0.0 }
 0x179   :  { %v555_v53 = vadd.f32 %v554_v37, %v553_v21  ;;  %v568_v5 = vadd.f32 %v567_v62, %v566_v19  ;;  %v1192_v54 = vmov 16   ;;  %v1193_v18 = vmov 17  }
 0x17a   :  { %v1194_v46 = vmov 40  }
 0x17b   :  { %556 = vadd.xlane.f32.xlu2 %v555_v53  ;;  %569 = vadd.xlane.f32.xlu1 %v568_v5 }
 0x18c   :  { %v582_v58 = vpop.permute.xlu0 %581 }
 0x193   :  { %586 = vperm.xlu2 %1096, %v1583_v22  }
 0x194   :  { %600 = vperm.xlu1 %1098, %v1583_v22  }
 0x19b   :  { %1099 = vset.pattern.permute.xlu2 %v1178_v11 }
 0x19c   :  { %1100 = vset.pattern.permute.xlu1 %v1175_v63  ;;  %620 = vperm.xlu2 %1099, %v1583_v22  }
 0x19d   :  { %632 = vperm.xlu1 %1100, %v1583_v22   ;;  %v594_v43 = vpop.permute.xlu0 %593 }
 0x1a4   :  { %1103 = vset.pattern.permute.xlu2 %v1146_v3 }
 0x1a5   :  { %1105 = vset.pattern.permute.xlu1 %v1177_v36 }
 0x1a6   :  { %672 = vperm.xlu1 %1105, %v1583_v22  }
 0x1ae   :  { %1107 = vset.pattern.permute.xlu1 %v1179_v52 }
 0x1af   :  { %828 = vperm.xlu1 %1107, %v1583_v22  }
 0x1b7   :  { %1110 = vset.pattern.permute.xlu1 %v1180_v41 }
 0x1b8   :  { %856 = vperm.xlu1 %1110, %v1583_v22  }
 0x1c0   :  { %1112 = vset.pattern.permute.xlu1 %v1181_v17 }
 0x1c1   :  { %880 = vperm.xlu1 %1112, %v1583_v22  }
 0x1c9   :  { %1115 = vset.pattern.permute.xlu1 %v1184_v56 }
 0x1ca   :  { %940 = vperm.xlu1 %1115, %v1583_v22  }
 0x1d2   :  { %1117 = vset.pattern.permute.xlu1 %v1187_v35 }
 0x1d3   :  { %964 = vperm.xlu1 %1117, %v1583_v22  }
 0x1ee   :  { %v557_v25 = vpop.xlane.xlu2 %556  ;;  %v570_v24 = vpop.xlane.xlu1 %569 }
 0x1ef   :  { %v565_v20 = vmul.f32 %v564_v16, %v557_v25  ;;  %v571_v26 = vmul.f32 %v570_v24, %v564_v16 }
 0x1f1   :  { %v573_v7 = vsel %vm572_vm8, %v565_v20, %v571_v26 }
 0x1f2   :  { %v578_v30 = vperm.slane %v573_v7, 0  ;;  %v589_v60 = vperm.slane %v573_v7, 1  ;;  %v596_v38 = vperm.slane %v573_v7, 2  ;;  %v603_v40 = vperm.slane %v573_v7, 3 }
 0x1f4   :  { %v579_v1 = vmul.f32 %v578_v30, %v576_v42  ;;  %v597_v29 = vmul.f32 %v596_v38, %v594_v43 }
 0x1f6   :  { %v587_v51 = vpop.permute.xlu2 %586  ;;  %v584_v4 = vadd.f32 %v582_v58, %v579_v1 }
 0x1f7   :  { %v590_v3 = vmul.f32 %v589_v60, %v587_v51 }
 0x1f9   :  { %v591_v33 = vadd.f32 %v590_v3, %v584_v4 }
 0x1fb   :  { %v598_v28 = vadd.f32 %v597_v29, %v591_v33 }
 0x1fe   :  { %v621_v59 = vpop.permute.xlu2 %620 }
 0x206   :  { %v601_v2 = vpop.permute.xlu1 %600 }
 0x207   :  { %v604_v31 = vmul.f32 %v603_v40, %v601_v2 }
 0x209   :  { %v605_v47 = vadd.f32 %v604_v31, %v598_v28 }
 0x20b   :  { %614 = vperm.xlu2 %1103, %v605_v47   ;;  %608 = vperm.xlu0 %1101, %v605_v47  }
 0x20f   :  { %v633_v19 = vpop.permute.xlu1 %632 }
 0x213   :  { %1104 = vset.pattern.permute.xlu2 %v1182_v50  ;;  %1102 = vset.pattern.permute.xlu0 %v1183_v32 }
 0x214   :  { %656 = vperm.xlu2 %1104, %v1583_v22   ;;  %640 = vperm.xlu0 %1102, %v1583_v22  }
 0x218   :  { %v673_v52 = vpop.permute.xlu1 %672 }
 0x21c   :  { %1106 = vset.pattern.permute.xlu2 %v1185_v57  ;;  %1108 = vset.pattern.permute.xlu0 %v1186_v23 }
 0x21d   :  { %688 = vperm.xlu2 %1106, %v1583_v22   ;;  %836 = vperm.xlu0 %1108, %v1583_v22  }
 0x225   :  { %1113 = vset.pattern.permute.xlu0 %v1188_v45  ;;  %1109 = vset.pattern.permute.xlu2 %v1189_v49 }
 0x226   :  { %896 = vperm.xlu0 %1113, %v1583_v22   ;;  %844 = vperm.xlu2 %1109, %v1583_v22  }
 0x22e   :  { %1118 = vset.pattern.permute.xlu0 %v1190_v8  ;;  %1111 = vset.pattern.permute.xlu2 %v1191_v27 }
 0x22f   :  { %980 = vperm.xlu0 %1118, %v1583_v22   ;;  %864 = vperm.xlu2 %1111, %v1583_v22  }
 0x237   :  { %1114 = vset.pattern.permute.xlu2 %v1192_v54  ;;  %1120 = vset.pattern.permute.xlu0 %v1194_v46 }
 0x238   :  { %928 = vperm.xlu2 %1114, %v1583_v22  }
 0x240   :  { %1116 = vset.pattern.permute.xlu2 %v1193_v18 }
 0x241   :  { %948 = vperm.xlu2 %1116, %v1583_v22  }
 0x249   :  { %1119 = vset.pattern.permute.xlu2 %v1194_v46 }
 0x24a   :  { %996 = vperm.xlu2 %1119, %v1583_v22  }
 0x265   :  { %v615_v9 = vpop.permute.xlu2 %614 }
 0x266   :  { %v617_v21 = vmul.f32 %v615_v9, %v1568_v61  ;;  %v618_v37 = vmul.f32 %v615_v9, %v1570_v34 }
 0x268   :  { %v625_v62 = vperm.slane %v617_v21, 0  ;;  %v626_v53 = vperm.slane %v618_v37, 0  ;;  %v677_v12 = vperm.slane %v617_v21, 3  ;;  %v678_v0 = vperm.slane %v618_v37, 3 }
 0x269   :  { %v661_v42 = vperm.slane %v617_v21, 2  ;;  %v662_v61 = vperm.slane %v618_v37, 2  ;;  %v645_v24 = vperm.slane %v617_v21, 1  ;;  %v646_v20 = vperm.slane %v618_v37, 1 }
 0x26a   :  { %v629_v11 = vmul.f32 %v625_v62, %v621_v59  ;;  %v630_v6 = vmul.f32 %v626_v53, %v621_v59  ;;  %v681_v17 = vmul.f32 %v677_v12, %v673_v52  ;;  %v682_v50 = vmul.f32 %v678_v0, %v673_v52  ;;  %v1142_v62 = vld.sshfl [vmem:[#allocation1] sm:$0xff pattern:$0x75316420] }
 0x26c   :  { %v638_v30 = vadd.f32 %v633_v19, %v630_v6 }
 0x26e   :  { %v657_v16 = vpop.permute.xlu2 %656 }
 0x26f   :  { %v665_v33 = vmul.f32 %v661_v42, %v657_v16  ;;  %v666_v29 = vmul.f32 %v662_v61, %v657_v16 }
 0x277   :  { %v689_v49 = vpop.permute.xlu2 %688 }
 0x27d   :  { %v609_v5 = vpop.permute.xlu0 %608 }
 0x27e   :  { %v611_v63 = vmul.f32 %v609_v5, %v1564_v44  ;;  %v612_v10 = vmul.f32 %v609_v5, %v1566_v48  ;;  %v637_v44 = vadd.f32 %v633_v19, %v629_v11  ;;  %v1143_v5 = vld.sshfl [vmem:[#allocation1 + $0x8] sm:$0xff pattern:$0x75316420] }
 0x280   :  { %v623_v55 = vperm.slane %v611_v63, 0  ;;  %v624_v36 = vperm.slane %v612_v10, 0  ;;  %v659_v34 = vperm.slane %v611_v63, 2  ;;  %v660_v25 = vperm.slane %v612_v10, 2 }
 0x281   :  { %v643_v26 = vperm.slane %v611_v63, 1  ;;  %v644_v7 = vperm.slane %v612_v10, 1  ;;  %v675_v48 = vperm.slane %v611_v63, 3  ;;  %v676_v58 = vperm.slane %v612_v10, 3 }
 0x282   :  { %v627_v39 = vmul.f32 %v623_v55, %v621_v59  ;;  %v628_v22 = vmul.f32 %v624_v36, %v621_v59  ;;  %v663_v40 = vmul.f32 %v659_v34, %v657_v16  ;;  %v664_v2 = vmul.f32 %v660_v25, %v657_v16 }
 0x283   :  { %v679_v32 = vmul.f32 %v675_v48, %v673_v52  ;;  %v680_v56 = vmul.f32 %v676_v58, %v673_v52 }
 0x284   :  { %v635_v51 = vadd.f32 %v633_v19, %v627_v39  ;;  %v636_v60 = vadd.f32 %v633_v19, %v628_v22 }
 0x286   :  { %v641_v1 = vpop.permute.xlu0 %640 }
 0x287   :  { %v647_v4 = vmul.f32 %v643_v26, %v641_v1  ;;  %v648_v3 = vmul.f32 %v644_v7, %v641_v1  ;;  %v649_v38 = vmul.f32 %v645_v24, %v641_v1  ;;  %v650_v43 = vmul.f32 %v646_v20, %v641_v1 }
 0x289   :  { %v651_v28 = vadd.f32 %v647_v4, %v635_v51  ;;  %v652_v31 = vadd.f32 %v648_v3, %v636_v60  ;;  %v653_v41 = vadd.f32 %v649_v38, %v637_v44  ;;  %v654_v47 = vadd.f32 %v650_v43, %v638_v30 }
 0x28b   :  { %v667_v57 = vadd.f32 %v663_v40, %v651_v28  ;;  %v668_v23 = vadd.f32 %v664_v2, %v652_v31  ;;  %v669_v35 = vadd.f32 %v665_v33, %v653_v41  ;;  %v670_v45 = vadd.f32 %v666_v29, %v654_v47 }
 0x28d   :  { %v683_v8 = vadd.f32 %v679_v32, %v667_v57  ;;  %v684_v27 = vadd.f32 %v680_v56, %v668_v23  ;;  %v685_v54 = vadd.f32 %v681_v17, %v669_v35  ;;  %v686_v18 = vadd.f32 %v682_v50, %v670_v45 }
 0x28f   :  { %v691_v46 = vmul.f32 %v689_v49, %v683_v8  ;;  %v692_v59 = vmul.f32 %v689_v49, %v684_v27  ;;  %v693_v9 = vmul.f32 %v689_v49, %v685_v54  ;;  %v694_v21 = vmul.f32 %v689_v49, %v686_v18 }
 0x291   :  { %v1612_v37 = vadd.f32 %v691_v46, %v1238_v13  ;;  %v1615_v19 = vadd.f32 %v692_v59, %v1240_v14  ;;  %v1617_v53 = vadd.f32 %v1142_v62, %v693_v9  ;;  %v1619_v63 = vadd.f32 %v1143_v5, %v694_v21 }
 0x293   :  { %v699_v10 = vsel %vm34_vm0, %v1612_v37, 0.0  ;;  %v706_v55 = vsel %vm34_vm0, %v1615_v19, 0.0  ;;  %v713_v36 = vsel %vm34_vm0, %v1617_v53, 0.0  ;;  %v720_v13 = vsel %vm34_vm0, %v1619_v63, 0.0 }
 0x294   :  { %v700_v14 = vrot.slane %v699_v10, 4  ;;  %v707_v11 = vrot.slane %v706_v55, 4  ;;  %v714_v6 = vrot.slane %v713_v36, 4  ;;  %v721_v39 = vrot.slane %v720_v13, 4 }
 0x295   :  { %v731_v22 = vmul.f32 %v1612_v37, %v1612_v37  ;;  %v732_v12 = vmul.f32 %v1615_v19, %v1615_v19  ;;  %v733_v0 = vmul.f32 %v1617_v53, %v1617_v53  ;;  %v734_v42 = vmul.f32 %v1619_v63, %v1619_v63 }
 0x296   :  { %v701_v61 = vadd.f32 %v700_v14, %v699_v10  ;;  %v708_v16 = vadd.f32 %v707_v11, %v706_v55  ;;  %v715_v34 = vadd.f32 %v714_v6, %v713_v36  ;;  %v722_v25 = vadd.f32 %v721_v39, %v720_v13 }
 0x297   :  { %v735_v24 = vsel %vm34_vm0, %v731_v22, 0.0  ;;  %v742_v20 = vsel %vm34_vm0, %v732_v12, 0.0  ;;  %v749_v26 = vsel %vm34_vm0, %v733_v0, 0.0  ;;  %v756_v7 = vsel %vm34_vm0, %v734_v42, 0.0 }
 0x298   :  { %v736_v44 = vrot.slane %v735_v24, 4  ;;  %v743_v30 = vrot.slane %v742_v20, 4  ;;  %v750_v48 = vrot.slane %v749_v26, 4  ;;  %v757_v58 = vrot.slane %v756_v7, 4 }
 0x299   :  { %v702_v1 = vrot.slane %v701_v61, 2  ;;  %v709_v51 = vrot.slane %v708_v16, 2  ;;  %v716_v60 = vrot.slane %v715_v34, 2  ;;  %v723_v52 = vrot.slane %v722_v25, 2 }
 0x29a   :  { %v737_v4 = vadd.f32 %v736_v44, %v735_v24  ;;  %v744_v3 = vadd.f32 %v743_v30, %v742_v20  ;;  %v751_v38 = vadd.f32 %v750_v48, %v749_v26  ;;  %v758_v43 = vadd.f32 %v757_v58, %v756_v7 }
 0x29b   :  { %v703_v33 = vadd.f32 %v702_v1, %v701_v61  ;;  %v710_v29 = vadd.f32 %v709_v51, %v708_v16  ;;  %v717_v40 = vadd.f32 %v716_v60, %v715_v34  ;;  %v724_v2 = vadd.f32 %v723_v52, %v722_v25 }
 0x29c   :  { %v738_v28 = vrot.slane %v737_v4, 2  ;;  %v745_v31 = vrot.slane %v744_v3, 2  ;;  %v752_v41 = vrot.slane %v751_v38, 2  ;;  %v759_v47 = vrot.slane %v758_v43, 2 }
 0x29d   :  { %v704_v17 = vrot.slane %v703_v33, 1  ;;  %v711_v50 = vrot.slane %v710_v29, 1  ;;  %v718_v32 = vrot.slane %v717_v40, 1  ;;  %v725_v56 = vrot.slane %v724_v2, 1 }
 0x29e   :  { %v739_v57 = vadd.f32 %v738_v28, %v737_v4  ;;  %v746_v23 = vadd.f32 %v745_v31, %v744_v3  ;;  %v753_v35 = vadd.f32 %v752_v41, %v751_v38  ;;  %v760_v45 = vadd.f32 %v759_v47, %v758_v43 }
 0x29f   :  { %v705_v49 = vadd.f32 %v704_v17, %v703_v33  ;;  %v712_v8 = vadd.f32 %v711_v50, %v710_v29  ;;  %v719_v27 = vadd.f32 %v718_v32, %v717_v40  ;;  %v726_v54 = vadd.f32 %v725_v56, %v724_v2  ;;  %v829_v33 = vpop.permute.xlu1 %828  ;;  %v845_v56 = vpop.permute.xlu2 %844 }
 0x2a0   :  { %v740_v18 = vrot.slane %v739_v57, 1  ;;  %v747_v46 = vrot.slane %v746_v23, 1  ;;  %v754_v59 = vrot.slane %v753_v35, 1  ;;  %v761_v9 = vrot.slane %v760_v45, 1 }
 0x2a1   :  { %v1642_v21 = vmul.f32 %v705_v49, %v1267_v15  ;;  %v1645_v62 = vmul.f32 %v712_v8, %v1267_v15  ;;  %v1648_v5 = vmul.f32 %v719_v27, %v1267_v15  ;;  %v1651_v10 = vmul.f32 %v726_v54, %v1267_v15 }
 0x2a2   :  { %v741_v55 = vadd.f32 %v740_v18, %v739_v57  ;;  %v748_v36 = vadd.f32 %v747_v46, %v746_v23  ;;  %v755_v13 = vadd.f32 %v754_v59, %v753_v35  ;;  %v762_v14 = vadd.f32 %v761_v9, %v760_v45 }
 0x2a3   :  { %v767_v11 = vmul.f32 %v1642_v21, %v1642_v21  ;;  %v768_v6 = vmul.f32 %v1645_v62, %v1645_v62  ;;  %v769_v39 = vmul.f32 %v1648_v5, %v1648_v5  ;;  %v770_v22 = vmul.f32 %v1651_v10, %v1651_v10 }
 0x2a4   :  { %v763_v12 = vmul.f32 %v741_v55, %v1267_v15  ;;  %v764_v0 = vmul.f32 %v748_v36, %v1267_v15  ;;  %v765_v42 = vmul.f32 %v755_v13, %v1267_v15  ;;  %v766_v61 = vmul.f32 %v762_v14, %v1267_v15  ;;  %v837_v13 = vpop.permute.xlu0 %836 }
 0x2a5   :  { %v819_v31 = vsub.f32 %v1612_v37, %v1642_v21  ;;  %v820_v17 = vsub.f32 %v1615_v19, %v1645_v62  ;;  %v821_v49 = vsub.f32 %v1617_v53, %v1648_v5  ;;  %v822_v46 = vsub.f32 %v1619_v63, %v1651_v10 }
 0x2a6   :  { %v771_v16 = vsub.f32 %v763_v12, %v767_v11  ;;  %v772_v34 = vsub.f32 %v764_v0, %v768_v6  ;;  %v773_v25 = vsub.f32 %v765_v42, %v769_v39  ;;  %v774_v24 = vsub.f32 %v766_v61, %v770_v22 }
 0x2a7   :  { %v857_v14 = vpop.permute.xlu1 %856  ;;  %v865_v61 = vpop.permute.xlu2 %864 }
 0x2a8   :  { %v775_v20 = vadd.f32 1e-06, %v771_v16  ;;  %v776_v26 = vadd.f32 1e-06, %v772_v34  ;;  %v777_v7 = vadd.f32 1e-06, %v773_v25 }
 0x2a9   :  { %v778_v44 = vadd.f32 1e-06, %v774_v24 }
 0x2aa   :  { %1133 = vrsqrt.f32 %v775_v20  ;;  %vm785_vm11 = vweird.f32 %v775_v20  ;;  %vm795_vm14 = vweird.f32 %v776_v26  ;;  %vm805_vm2 = vweird.f32 %v777_v7 }
 0x2ab   :  { %1135 = vrsqrt.f32 %v776_v26  ;;  %vm815_vm4 = vweird.f32 %v778_v44 }
 0x2ac   :  { %1137 = vrsqrt.f32 %v777_v7 }
 0x2ad   :  { %1139 = vrsqrt.f32 %v778_v44 }
 0x2b0   :  { %v1134_v30 = vpop.eup %1133 }
 0x2b1   :  { %v1136_v48 = vpop.eup %1135  ;;  %v780_v58 = vmul.f32 %v1134_v30, %v775_v20  ;;  %vm786_vm9 = vweird.f32 %v1134_v30 }
 0x2b2   :  { %v1138_v1 = vpop.eup %1137  ;;  %v790_v51 = vmul.f32 %v1136_v48, %v776_v26  ;;  %vm796_vm10 = vweird.f32 %v1136_v48  ;;  %vm787_vm13 = vmor %vm785_vm11, %vm786_vm9 }
 0x2b3   :  { %v1140_v60 = vpop.eup %1139  ;;  %v781_v52 = vmul.f32 %v1134_v30, %v780_v58  ;;  %v800_v15 = vmul.f32 %v1138_v1, %v777_v7  ;;  %vm806_vm12 = vweird.f32 %v1138_v1  ;;  %vm797_vm1 = vmor %vm795_vm14, %vm796_vm10 }
 0x2b4   :  { %v791_v4 = vmul.f32 %v1136_v48, %v790_v51  ;;  %v810_v3 = vmul.f32 %v1140_v60, %v778_v44  ;;  %vm816_vm15 = vweird.f32 %v1140_v60  ;;  %vm807_vm3 = vmor %vm805_vm2, %vm806_vm12 }
 0x2b5   :  { %v782_v38 = vmul.f32 0.5, %v781_v52  ;;  %v801_v43 = vmul.f32 %v1138_v1, %v800_v15  ;;  %vm817_vm5 = vmor %vm815_vm4, %vm816_vm15 }
 0x2b6   :  { %v792_v29 = vmul.f32 0.5, %v791_v4  ;;  %v811_v40 = vmul.f32 %v1140_v60, %v810_v3 }
 0x2b7   :  { %v783_v2 = vsub.f32 1.5, %v782_v38  ;;  %v802_v28 = vmul.f32 0.5, %v801_v43 }
 0x2b8   :  { %v793_v41 = vsub.f32 1.5, %v792_v29  ;;  %v812_v47 = vmul.f32 0.5, %v811_v40  ;;  %v881_v40 = vpop.permute.xlu1 %880 }
 0x2b9   :  { %v784_v50 = vmul.f32 %v1134_v30, %v783_v2  ;;  %v803_v32 = vsub.f32 1.5, %v802_v28  ;;  %v897_v28 = vpop.permute.xlu0 %896 }
 0x2ba   :  { %v794_v57 = vmul.f32 %v1136_v48, %v793_v41  ;;  %v813_v23 = vsub.f32 1.5, %v812_v47 }
 0x2bb   :  { %v788_v35 = vsel %vm787_vm13, %v1134_v30, %v784_v50  ;;  %v804_v45 = vmul.f32 %v1138_v1, %v803_v32 }
 0x2bc   :  { %v798_v8 = vsel %vm797_vm1, %v1136_v48, %v794_v57  ;;  %v814_v27 = vmul.f32 %v1140_v60, %v813_v23  ;;  %v823_v54 = vmul.f32 %v819_v31, %v788_v35 }
 0x2bd   :  { %v808_v18 = vsel %vm807_vm3, %v1138_v1, %v804_v45  ;;  %v824_v59 = vmul.f32 %v820_v17, %v798_v8  ;;  %v929_v8 = vpop.permute.xlu2 %928 }
 0x2be   :  { %v818_v9 = vsel %vm817_vm5, %v1140_v60, %v814_v27  ;;  %v825_v21 = vmul.f32 %v821_v49, %v808_v18  ;;  %v831_v62 = vmul.f32 %v829_v33, %v823_v54 }
 0x2bf   :  { %v826_v55 = vmul.f32 %v822_v46, %v818_v9  ;;  %v832_v36 = vmul.f32 %v829_v33, %v824_v59 }
 0x2c0   :  { %v833_v11 = vmul.f32 %v829_v33, %v825_v21  ;;  %v839_v5 = vadd.f32 %v837_v13, %v831_v62 }
 0x2c1   :  { %v834_v6 = vmul.f32 %v829_v33, %v826_v55  ;;  %v840_v39 = vadd.f32 %v837_v13, %v832_v36 }
 0x2c2   :  { %v841_v22 = vadd.f32 %v837_v13, %v833_v11  ;;  %v847_v12 = vperm.slane %v839_v5, 0  ;;  %v867_v16 = vperm.slane %v839_v5, 1  ;;  %v899_v48 = vperm.slane %v839_v5, 3 }
 0x2c3   :  { %v842_v0 = vadd.f32 %v837_v13, %v834_v6  ;;  %v848_v42 = vperm.slane %v840_v39, 0  ;;  %v868_v34 = vperm.slane %v840_v39, 1  ;;  %v900_v4 = vperm.slane %v840_v39, 3  ;;  %v941_v6 = vpop.permute.xlu1 %940 }
 0x2c4   :  { %v849_v10 = vperm.slane %v841_v22, 0  ;;  %v851_v25 = vmul.f32 %v847_v12, %v845_v56  ;;  %v869_v24 = vperm.slane %v841_v22, 1  ;;  %v871_v51 = vmul.f32 %v867_v16, %v865_v61 }
 0x2c5   :  { %v850_v20 = vperm.slane %v842_v0, 0  ;;  %v852_v26 = vmul.f32 %v848_v42, %v845_v56  ;;  %v870_v7 = vperm.slane %v842_v0, 1  ;;  %v872_v60 = vmul.f32 %v868_v34, %v865_v61 }
 0x2c6   :  { %v853_v44 = vmul.f32 %v849_v10, %v845_v56  ;;  %v859_v30 = vadd.f32 %v857_v14, %v851_v25  ;;  %v873_v15 = vmul.f32 %v869_v24, %v865_v61  ;;  %v901_v3 = vperm.slane %v841_v22, 3  ;;  %v949_v25 = vpop.permute.xlu2 %948 }
 0x2c7   :  { %v854_v58 = vmul.f32 %v850_v20, %v845_v56  ;;  %v860_v1 = vadd.f32 %v857_v14, %v852_v26  ;;  %v874_v43 = vmul.f32 %v870_v7, %v865_v61  ;;  %v883_v31 = vperm.slane %v839_v5, 2 }
 0x2c8   :  { %v861_v52 = vadd.f32 %v857_v14, %v853_v44  ;;  %v875_v33 = vadd.f32 %v871_v51, %v859_v30  ;;  %v884_v41 = vperm.slane %v840_v39, 2  ;;  %v885_v47 = vperm.slane %v841_v22, 2 }
 0x2c9   :  { %v862_v38 = vadd.f32 %v857_v14, %v854_v58  ;;  %v876_v29 = vadd.f32 %v872_v60, %v860_v1  ;;  %v902_v50 = vperm.slane %v842_v0, 3  ;;  %v886_v32 = vperm.slane %v842_v0, 2 }
 0x2ca   :  { %v877_v2 = vadd.f32 %v873_v15, %v861_v52  ;;  %v887_v56 = vmul.f32 %v883_v31, %v881_v40  ;;  %v888_v57 = vmul.f32 %v884_v41, %v881_v40  ;;  %v889_v23 = vmul.f32 %v885_v47, %v881_v40  ;;  %v981_v47 = vpop.permute.xlu0 %980 }
 0x2cb   :  { %v878_v17 = vadd.f32 %v874_v43, %v862_v38  ;;  %v903_v35 = vmul.f32 %v899_v48, %v897_v28  ;;  %v904_v45 = vmul.f32 %v900_v4, %v897_v28  ;;  %v890_v49 = vmul.f32 %v886_v32, %v881_v40  ;;  %v965_v41 = vpop.permute.xlu1 %964 }
 0x2cc   :  { %v905_v27 = vmul.f32 %v901_v3, %v897_v28  ;;  %v891_v54 = vadd.f32 %v887_v56, %v875_v33  ;;  %v892_v18 = vadd.f32 %v888_v57, %v876_v29  ;;  %v893_v46 = vadd.f32 %v889_v23, %v877_v2 }
 0x2cd   :  { %v906_v59 = vmul.f32 %v902_v50, %v897_v28  ;;  %v894_v9 = vadd.f32 %v890_v49, %v878_v17 }
 0x2ce   :  { %v907_v21 = vadd.f32 %v903_v35, %v891_v54  ;;  %v908_v62 = vadd.f32 %v904_v45, %v892_v18  ;;  %v909_v55 = vadd.f32 %v905_v27, %v893_v46 }
 0x2cf   :  { %v910_v36 = vadd.f32 %v906_v59, %v894_v9 }
 0x2d0   :  { %v915_v13 = vrot.slane %v907_v21, 4  ;;  %v916_v14 = vrot.slane %v908_v62, 4  ;;  %v917_v11 = vrot.slane %v909_v55, 4 }
 0x2d1   :  { %v918_v5 = vrot.slane %v910_v36, 4 }
 0x2d2   :  { %v923_v39 = vmul.f32 %v915_v13, %v907_v21  ;;  %v924_v22 = vmul.f32 %v916_v14, %v908_v62  ;;  %v925_v12 = vmul.f32 %v917_v11, %v909_v55  ;;  %v997_v21 = vpop.permute.xlu2 %996 }
 0x2d3   :  { %v926_v0 = vmul.f32 %v918_v5, %v910_v36 }
 0x2d4   :  { %v931_v42 = vperm.slane %v923_v39, 0  ;;  %v932_v61 = vperm.slane %v924_v22, 0  ;;  %v933_v16 = vperm.slane %v925_v12, 0  ;;  %v951_v34 = vperm.slane %v923_v39, 1 }
 0x2d5   :  { %v934_v10 = vperm.slane %v926_v0, 0  ;;  %v952_v24 = vperm.slane %v924_v22, 1  ;;  %v953_v20 = vperm.slane %v925_v12, 1  ;;  %v954_v26 = vperm.slane %v926_v0, 1 }
 0x2d6   :  { %v935_v7 = vmul.f32 %v931_v42, %v929_v8  ;;  %v936_v44 = vmul.f32 %v932_v61, %v929_v8  ;;  %v937_v30 = vmul.f32 %v933_v16, %v929_v8  ;;  %v955_v60 = vmul.f32 %v951_v34, %v949_v25 }
 0x2d7   :  { %v938_v48 = vmul.f32 %v934_v10, %v929_v8  ;;  %v956_v15 = vmul.f32 %v952_v24, %v949_v25  ;;  %v957_v4 = vmul.f32 %v953_v20, %v949_v25  ;;  %v958_v3 = vmul.f32 %v954_v26, %v949_v25 }
 0x2d8   :  { %v943_v58 = vadd.f32 %v941_v6, %v935_v7  ;;  %v944_v1 = vadd.f32 %v941_v6, %v936_v44  ;;  %v945_v51 = vadd.f32 %v941_v6, %v937_v30  ;;  %v983_v38 = vperm.slane %v923_v39, 3 }
 0x2d9   :  { %v946_v52 = vadd.f32 %v941_v6, %v938_v48  ;;  %v984_v43 = vperm.slane %v924_v22, 3  ;;  %v985_v33 = vperm.slane %v925_v12, 3  ;;  %v986_v29 = vperm.slane %v926_v0, 3 }
 0x2da   :  { %v959_v40 = vadd.f32 %v955_v60, %v943_v58  ;;  %v960_v2 = vadd.f32 %v956_v15, %v944_v1  ;;  %v961_v28 = vadd.f32 %v957_v4, %v945_v51  ;;  %v967_v17 = vperm.slane %v923_v39, 2 }
 0x2db   :  { %v962_v31 = vadd.f32 %v958_v3, %v946_v52  ;;  %v968_v50 = vperm.slane %v924_v22, 2  ;;  %v969_v32 = vperm.slane %v925_v12, 2  ;;  %v970_v56 = vperm.slane %v926_v0, 2 }
 0x2dc   :  { %v971_v57 = vmul.f32 %v967_v17, %v965_v41  ;;  %v987_v49 = vmul.f32 %v983_v38, %v981_v47  ;;  %v988_v8 = vmul.f32 %v984_v43, %v981_v47  ;;  %v989_v27 = vmul.f32 %v985_v33, %v981_v47 }
 0x2dd   :  { %v972_v23 = vmul.f32 %v968_v50, %v965_v41  ;;  %v973_v35 = vmul.f32 %v969_v32, %v965_v41  ;;  %v974_v45 = vmul.f32 %v970_v56, %v965_v41  ;;  %v990_v54 = vmul.f32 %v986_v29, %v981_v47 }
 0x2de   :  { %v975_v18 = vadd.f32 %v971_v57, %v959_v40 }
 0x2df   :  { %v976_v46 = vadd.f32 %v972_v23, %v960_v2  ;;  %v977_v59 = vadd.f32 %v973_v35, %v961_v28  ;;  %v978_v9 = vadd.f32 %v974_v45, %v962_v31 }
 0x2e0   :  { %v991_v62 = vadd.f32 %v987_v49, %v975_v18 }
 0x2e1   :  { %v992_v55 = vadd.f32 %v988_v8, %v976_v46  ;;  %v993_v36 = vadd.f32 %v989_v27, %v977_v59  ;;  %v994_v13 = vadd.f32 %v990_v54, %v978_v9 }
 0x2e2   :  { %v999_v14 = vmul.f32 %v997_v21, %v991_v62 }
 0x2e3   :  { %v1000_v11 = vmul.f32 %v997_v21, %v992_v55  ;;  %v1001_v5 = vmul.f32 %v997_v21, %v993_v36  ;;  %v1002_v6 = vmul.f32 %v997_v21, %v994_v13 }
 0x2e4   :  { %v1003_v12 = vadd.f32 %v999_v14, %v1612_v37 }
 0x2e5   :  { %v1004_v39 = vadd.f32 %v1000_v11, %v1615_v19  ;;  %v1006_v22 = vadd.f32 %v1002_v6, %v1619_v63  ;;  %v1005_v0 = vadd.f32 %v1001_v5, %v1617_v53 }
 0x2e7   :  { %v1009_v42 = vrot.slane %v1004_v39, 4  ;;  %v1015_v61 = vrot.slane %v1006_v22, 4 }
 0x2e9   :  { %v1010_v16 = vsel %vm34_vm0, %v1003_v12, %v1009_v42  ;;  %v1016_v34 = vsel %vm34_vm0, %v1005_v0, %v1015_v61 }
 0x2ea   :  { %1012 = vst [vmem:[%s1688_s3] sm:$0xff] %v1010_v16 }
 0x2eb   :  { %1025 = vst [vmem:[%s1688_s3 + $0x8] sm:$0xff] %v1016_v34 }

</bundles_post_ra>
